<compile_context>
chip_gen: v6e
topology: v6e:2x2x1
jax: 0.10.0
libtpu: 0.0.40
codegen_flags: <defaults>
</compile_context>

<pallas_src>
import functools

import jax
import jax.numpy as jnp
from jax.experimental import pallas as pl
from jax.experimental.pallas import tpu as pltpu


def _sigmoid(x):
    # tanh issues on the EUP (transcendental) slot; avoids a VALU divide.
    return 0.5 * (jnp.tanh(0.5 * x) + 1.0)


def _swish(x):
    return x * _sigmoid(x)


# ----------------------------------------------------------------------------
# Pallas kernel: one grid step = one batch tile; everything stays lane-dense 2-D.
# ----------------------------------------------------------------------------
def _mbconv_kernel(
    x_ref,       # (B*H,  W*Cin)       f32   lane-dense input view
    shift_ref,   # (k, B*Ho, B*H)      bf16  per-image row-shift selection matrices
    w_exp_ref,   # (W*Cin, W*Ch)       bf16  block-diag expand 1x1 conv (bn1 folded)
    w_dw_ref,    # (k, W*Ch, Wo*Ch)    bf16  banded depthwise matrices (bn2 folded)
    w_proj_ref,  # (Wo*Ch, Wo*Cout)    bf16  block-diag project 1x1 conv (bn3 folded)
    w_fc1_ref,   # (Wo*Ch, Cr)         f32   SE fc1, lane-tiled over w
    w_fc2_ref,   # (Cr, Wo*Ch)         f32   SE fc2, lane-tiled over w
    bias_ref,    # (5, Lmax)           f32   rows: b1 | b2 | b3 | b_fc1 | b_fc2
    o_ref,       # (B*Ho, Wo*Cout)     f32
    *, B, H, W, Ch, Cout, Cr, k, Ho, Wo, use_residual,
):
    R, Ro = B * H, B * Ho
    L, Lo, Lout = W * Ch, Wo * Ch, Wo * Cout

    x = x_ref[...]                                             # (R, W*Cin) f32
    bias = bias_ref[...]
    b1 = bias[0:1, 0:L]
    b2 = bias[1:2, 0:Lo]
    b3 = bias[2:3, 0:Lout]
    b_fc1 = bias[3:4, 0:Cr]
    b_fc2 = bias[4:5, 0:Lo]

    # ---- expand 1x1 conv (block-diagonal lane matmul, bn1 scale folded) + swish
    h = jnp.dot(x.astype(jnp.bfloat16), w_exp_ref[...],
                preferred_element_type=jnp.float32)            # (R, L)
    h = _swish(h + b1)

    # ---- depthwise kxk conv ("same" zero pad, stride) + bn2 + swish -------------
    # Row (h) shift / pad / stride-h decimation  -> k selection matmuls.
    # Column (w) shift, per-channel taps, bn2 scale, stride-w decimation -> k banded
    # (W*Ch, Wo*Ch) matmuls.  All k*k MACs therefore run on the MXU.
    h_b = h.astype(jnp.bfloat16)
    acc = jnp.zeros((Ro, Lo), jnp.float32)
    for dy in range(k):
        h_dy = jnp.dot(shift_ref[dy], h_b,
                       preferred_element_type=jnp.float32)     # (Ro, L) exact row pick
        acc = acc + jnp.dot(h_dy.astype(jnp.bfloat16), w_dw_ref[dy],
                            preferred_element_type=jnp.float32)
    h2 = _swish(acc + b2)                                      # (Ro, Lo)

    # ---- squeeze-excitation ------------------------------------------------------
    # Global average pool per image and the per-row broadcast of the SE scale are
    # tiny indicator matmuls built from 2-D iotas (no 3-D reshapes in the kernel);
    # the w-grouping is folded into the lane-tiled SE weights built by the wrapper.
    bi = jax.lax.broadcasted_iota(jnp.int32, (B, Ro), 0)
    ri = jax.lax.broadcasted_iota(jnp.int32, (B, Ro), 1)
    member = jnp.where((ri >= bi * Ho) & (ri < (bi + 1) * Ho), 1.0, 0.0)   # (B, Ro)
    pooled = jnp.dot(member, h2,
                     preferred_element_type=jnp.float32) * (1.0 / (Ho * Wo))  # (B, Lo)
    z = jnp.maximum(
        jnp.dot(pooled, w_fc1_ref[...], preferred_element_type=jnp.float32) + b_fc1,
        0.0)                                                   # (B, Cr)
    scale = _sigmoid(
        jnp.dot(z, w_fc2_ref[...], preferred_element_type=jnp.float32) + b_fc2)  # (B, Lo)
    ri2 = jax.lax.broadcasted_iota(jnp.int32, (Ro, B), 0)
    bi2 = jax.lax.broadcasted_iota(jnp.int32, (Ro, B), 1)
    member_t = jnp.where((ri2 >= bi2 * Ho) & (ri2 < (bi2 + 1) * Ho), 1.0, 0.0)  # (Ro, B)
    h2 = h2 * jnp.dot(member_t, scale, preferred_element_type=jnp.float32)      # (Ro, Lo)

    # ---- project 1x1 conv (block-diagonal, bn3 scale folded) + residual ----------
    out = jnp.dot(h2.astype(jnp.bfloat16), w_proj_ref[...],
                  preferred_element_type=jnp.float32) + b3     # (Ro, Lout)
    if use_residual:
        out = out + x
    o_ref[...] = out.astype(o_ref.dtype)


# ----------------------------------------------------------------------------
# Wrapper: fold BN scales into weights, build lane/row-space matrices, call Pallas.
# ----------------------------------------------------------------------------
def _build_dw_mats(w_dw, s2, W, Wo, stride, p):
    """k banded matrices A[dy] with A[dy][w*Ch+c, wo*Ch+c] = w_dw[dy,dx,c]*s2[c]
    whenever w == wo*stride + dx - p (zero padding outside the image)."""
    k, _, Ch = w_dw.shape
    wi = jnp.arange(W)[:, None]
    wo = jnp.arange(Wo)[None, :]
    mats = []
    for dy in range(k):
        a = jnp.zeros((W * Ch, Wo * Ch), jnp.float32)
        for dx in range(k):
            sel = (wi == wo * stride + dx - p).astype(jnp.float32)   # (W, Wo)
            a = a + jnp.kron(sel, jnp.diag(w_dw[dy, dx] * s2))
        mats.append(a)
    return jnp.stack(mats)                                           # (k, W*Ch, Wo*Ch)


def _build_row_shift(B, H, Ho, stride, k, p):
    """k selection matrices S[dy] with S[dy][b*Ho+ho, b*H+h] = 1 when
    h == ho*stride + dy - p (same image, zero padding outside)."""
    ro = jnp.arange(B * Ho)
    r = jnp.arange(B * H)
    b_o, ho = ro // Ho, ro % Ho
    b_i, hh = r // H, r % H
    mats = []
    for dy in range(k):
        src = ho * stride + dy - p
        sel = (b_o[:, None] == b_i[None, :]) & (src[:, None] == hh[None, :])
        mats.append(sel.astype(jnp.float32))
    return jnp.stack(mats)                                           # (k, B*Ho, B*H)


def inverted_residual_block(x, params, *, stride, kernel_size, use_residual,
                            batch_tile=None):
    N, H, W, Cin = x.shape
    Ch = params["w_exp"].shape[1]
    Cout = params["w_proj"].shape[1]
    Cr = params["w_fc1"].shape[1]
    k = kernel_size
    p = k // 2
    Ho = (H + 2 * p - k) // stride + 1
    Wo = (W + 2 * p - k) // stride + 1

    assert k % 2 == 1, "TODO(synk): even depthwise kernel sizes not supported"
    if use_residual:
        assert stride == 1 and Cin == Cout, "residual requires stride==1 and Cin==Cout"

    B = N if batch_tile is None else batch_tile
    assert N % B == 0

    L, Lo, Lout = W * Ch, Wo * Ch, Wo * Cout
    Lmax = max(L, Lo, Lout)

    # ---- fold BN scales into conv weights; lane-tile the shifts/biases -----------
    s1, b1 = params["s1"].reshape(-1), params["b1"].reshape(-1)
    s2, b2 = params["s2"].reshape(-1), params["b2"].reshape(-1)
    s3, b3 = params["s3"].reshape(-1), params["b3"].reshape(-1)

    w_exp_bd = jnp.kron(jnp.eye(W, dtype=jnp.float32),
                        params["w_exp"] * s1[None, :]).astype(jnp.bfloat16)
    w_proj_bd = jnp.kron(jnp.eye(Wo, dtype=jnp.float32),
                         params["w_proj"] * s3[None, :]).astype(jnp.bfloat16)
    dw_mats = _build_dw_mats(params["w_dw"], s2, W, Wo, stride, p).astype(jnp.bfloat16)
    shift_mats = _build_row_shift(B, H, Ho, stride, k, p).astype(jnp.bfloat16)

    w_fc1t = jnp.tile(params["w_fc1"], (Wo, 1)).astype(jnp.float32)     # (Wo*Ch, Cr)
    w_fc2t = jnp.tile(params["w_fc2"], (1, Wo)).astype(jnp.float32)     # (Cr, Wo*Ch)

    bias_pack = jnp.zeros((5, Lmax), jnp.float32)
    bias_pack = bias_pack.at[0, :L].set(jnp.tile(b1, W))
    bias_pack = bias_pack.at[1, :Lo].set(jnp.tile(b2, Wo))
    bias_pack = bias_pack.at[2, :Lout].set(jnp.tile(b3, Wo))
    bias_pack = bias_pack.at[3, :Cr].set(params["b_fc1"].reshape(-1))
    bias_pack = bias_pack.at[4, :Lo].set(jnp.tile(params["b_fc2"].reshape(-1), Wo))

    x2 = x.reshape(N * H, W * Cin)            # lane-dense 2-D view (free reshape)

    kernel = functools.partial(
        _mbconv_kernel, B=B, H=H, W=W, Ch=Ch, Cout=Cout, Cr=Cr,
        k=k, Ho=Ho, Wo=Wo, use_residual=use_residual)

    out2 = pl.pallas_call(
        kernel,
        out_shape=jax.ShapeDtypeStruct((N * Ho, Wo * Cout), jnp.float32),
        grid_spec=pltpu.PrefetchScalarGridSpec(
            num_scalar_prefetch=0,
            grid=(N // B,),
            in_specs=[
                pl.BlockSpec((B * H, W * Cin), lambda n: (n, 0)),
                pl.BlockSpec(shift_mats.shape, lambda n: (0, 0, 0)),
                pl.BlockSpec(w_exp_bd.shape, lambda n: (0, 0)),
                pl.BlockSpec(dw_mats.shape, lambda n: (0, 0, 0)),
                pl.BlockSpec(w_proj_bd.shape, lambda n: (0, 0)),
                pl.BlockSpec(w_fc1t.shape, lambda n: (0, 0)),
                pl.BlockSpec(w_fc2t.shape, lambda n: (0, 0)),
                pl.BlockSpec(bias_pack.shape, lambda n: (0, 0)),
            ],
            out_specs=pl.BlockSpec((B * Ho, Wo * Cout), lambda n: (n, 0)),
        ),
        # Batch axis is embarrassingly parallel -> megacore chips can shard it.
        # Shapes here are tiny so no vmem_limit override is needed; for real MBConv
        # sizes add an H-row tile (with halo) and set vmem_limit_bytes (v7x: 64 MiB).
        compiler_params=pltpu.CompilerParams(
            dimension_semantics=("parallel",)),
    )(x2, shift_mats, w_exp_bd, dw_mats, w_proj_bd, w_fc1t, w_fc2t, bias_pack)

    return out2.reshape(N, Ho, Wo, Cout)


# ----------------------------------------------------------------------------
# Pure-JAX reference (same math from raw params, high precision, NHWC)
# ----------------------------------------------------------------------------
def reference(x, params, *, stride, kernel_size, use_residual):
    N, H, W, Cin = x.shape
    k = kernel_size
    p = k // 2
    Ho = (H + 2 * p - k) // stride + 1
    Wo = (W + 2 * p - k) // stride + 1
    hi = jax.lax.Precision.HIGHEST

    h = jnp.einsum("nhwc,cd->nhwd", x, params["w_exp"], precision=hi)
    h = h * params["s1"][0] + params["b1"][0]
    h = h * jax.nn.sigmoid(h)

    hp = jnp.pad(h, ((0, 0), (p, p), (p, p), (0, 0)))
    acc = jnp.zeros((N, Ho, Wo, h.shape[-1]), jnp.float32)
    for dy in range(k):
        for dx in range(k):
            patch = hp[:, dy:dy + stride * (Ho - 1) + 1:stride,
                          dx:dx + stride * (Wo - 1) + 1:stride, :]
            acc = acc + patch * params["w_dw"][dy, dx]
    h2 = acc * params["s2"][0] + params["b2"][0]
    h2 = h2 * jax.nn.sigmoid(h2)

    pooled = jnp.mean(h2, axis=(1, 2))                     # (N, Ch)
    z = jnp.maximum(jnp.dot(pooled, params["w_fc1"], precision=hi)
                    + params["b_fc1"][0], 0.0)
    scale = jax.nn.sigmoid(jnp.dot(z, params["w_fc2"], precision=hi)
                           + params["b_fc2"][0])
    h2 = h2 * scale[:, None, None, :]

    out = jnp.einsum("nhwc,cd->nhwd", h2, params["w_proj"], precision=hi)
    out = out * params["s3"][0] + params["b3"][0]
    if use_residual:
        out = out + x
    return out


# ----------------------------------------------------------------------------
def _fold_bn(gamma, beta, mean, var, eps=1e-5):
    s = gamma / jnp.sqrt(var + eps)
    return s, beta - mean * s


def make_params(key, Cin, Cout, Ch, Cr, k):
    ks = jax.random.split(key, 20)

    def n(i, shape, scl=0.1):
        return (scl * jax.random.normal(ks[i], shape)).astype(jnp.float32)

    def bn(i, C):
        gamma = 1.0 + n(i, (C,))
        beta = n(i + 1, (C,))
        mean = n(i + 2, (C,))
        var = jax.random.uniform(ks[i + 3], (C,), minval=0.5, maxval=1.5)
        s, b = _fold_bn(gamma, beta, mean, var)
        return (s.reshape(1, C).astype(jnp.float32),
                b.reshape(1, C).astype(jnp.float32))

    s1, b1 = bn(0, Ch)
    s2, b2 = bn(4, Ch)
    s3, b3 = bn(8, Cout)
    return {
        "w_exp": n(12, (Cin, Ch)),
        "s1": s1, "b1": b1,
        "w_dw": n(13, (k, k, Ch)),
        "s2": s2, "b2": b2,
        "w_fc1": n(14, (Ch, Cr)), "b_fc1": n(15, (1, Cr)),
        "w_fc2": n(16, (Cr, Ch)), "b_fc2": n(17, (1, Ch)),
        "w_proj": n(18, (Ch, Cout)),
        "s3": s3, "b3": b3,
    }


if __name__ == "__main__":
    key = jax.random.PRNGKey(0)
    N, H, W = 2, 16, 16
    Cin, Cout = 8, 8
    expansion, stride, ksize = 2, 1, 3
    se_ratio = 0.25
    Ch = Cin * expansion                        # 16
    Cr = max(1, Ch // int(1 / se_ratio))        # 4
    use_residual = (stride == 1 and Cin == Cout)

    kx, kp = jax.random.split(key)
    x = jax.random.normal(kx, (N, H, W, Cin), dtype=jnp.float32)   # NHWC
    params = make_params(kp, Cin, Cout, Ch, Cr, ksize)

    out = inverted_residual_block(
        x, params, stride=stride, kernel_size=ksize, use_residual=use_residual)
    out = jax.block_until_ready(out)

    ref = reference(x, params, stride=stride, kernel_size=ksize,
                    use_residual=use_residual)
    assert out.shape == ref.shape, (out.shape, ref.shape)
    # Big matmuls run with bf16 operands on the MXU (f32 accumulation), so the
    # tolerance is looser than a pure-f32 comparison would need.
    err = float(jnp.max(jnp.abs(out - ref)))
    assert jnp.allclose(out, ref, atol=1e-2, rtol=1e-2), err
    print("KERNEL_OK")
</pallas_src>

<mosaic_0001>
module attributes {stable_mosaic.version = 11 : i64} {
  func.func @_mbconv_kernel(%arg0: i32, %arg1: memref<32x128xf32, #tpu.memory_space<vmem>>, %arg2: memref<3x32x32xbf16, #tpu.memory_space<vmem>>, %arg3: memref<128x256xbf16, #tpu.memory_space<vmem>>, %arg4: memref<3x256x256xbf16, #tpu.memory_space<vmem>>, %arg5: memref<256x128xbf16, #tpu.memory_space<vmem>>, %arg6: memref<256x4xf32, #tpu.memory_space<vmem>>, %arg7: memref<4x256xf32, #tpu.memory_space<vmem>>, %arg8: memref<5x256xf32, #tpu.memory_space<vmem>>, %arg9: memref<32x128xf32, #tpu.memory_space<vmem>>) attributes {dimension_semantics = [#tpu.dimension_semantics<parallel>], iteration_bounds = array<i64: 1>, scalar_prefetch = 0 : i64, scratch_operands = 0 : i64, tpu.core_type = #tpu.core_type<tc>, window_params = [{transform_indices = @transform_0, window_bounds = array<i64: 32, 128>}, {pipeline_mode = #tpu.pipeline_mode<synchronous>, transform_indices = @transform_1, window_bounds = array<i64: 3, 32, 32>}, {pipeline_mode = #tpu.pipeline_mode<synchronous>, transform_indices = @transform_2, window_bounds = array<i64: 128, 256>}, {pipeline_mode = #tpu.pipeline_mode<synchronous>, transform_indices = @transform_3, window_bounds = array<i64: 3, 256, 256>}, {pipeline_mode = #tpu.pipeline_mode<synchronous>, transform_indices = @transform_4, window_bounds = array<i64: 256, 128>}, {pipeline_mode = #tpu.pipeline_mode<synchronous>, transform_indices = @transform_5, window_bounds = array<i64: 256, 4>}, {pipeline_mode = #tpu.pipeline_mode<synchronous>, transform_indices = @transform_6, window_bounds = array<i64: 4, 256>}, {pipeline_mode = #tpu.pipeline_mode<synchronous>, transform_indices = @transform_7, window_bounds = array<i64: 5, 256>}, {transform_indices = @transform_8, window_bounds = array<i64: 32, 128>}]} {
    %c0 = arith.constant 0 : index
    %c0_0 = arith.constant 0 : index
    %0 = vector.load %arg1[%c0, %c0_0] : memref<32x128xf32, #tpu.memory_space<vmem>>, vector<32x128xf32>
    %c0_1 = arith.constant 0 : index
    %c0_2 = arith.constant 0 : index
    %1 = vector.load %arg8[%c0_1, %c0_2] : memref<5x256xf32, #tpu.memory_space<vmem>>, vector<5x256xf32>
    %2 = vector.extract_strided_slice %1 {offsets = [0, 0], sizes = [1, 256], strides = [1, 1]} : vector<5x256xf32> to vector<1x256xf32>
    %3 = vector.extract_strided_slice %1 {offsets = [1, 0], sizes = [1, 256], strides = [1, 1]} : vector<5x256xf32> to vector<1x256xf32>
    %4 = vector.extract_strided_slice %1 {offsets = [2, 0], sizes = [1, 128], strides = [1, 1]} : vector<5x256xf32> to vector<1x128xf32>
    %5 = vector.extract_strided_slice %1 {offsets = [3, 0], sizes = [1, 4], strides = [1, 1]} : vector<5x256xf32> to vector<1x4xf32>
    %6 = vector.extract_strided_slice %1 {offsets = [4, 0], sizes = [1, 256], strides = [1, 1]} : vector<5x256xf32> to vector<1x256xf32>
    %7 = arith.truncf %0 : vector<32x128xf32> to vector<32x128xbf16>
    %c0_3 = arith.constant 0 : index
    %c0_4 = arith.constant 0 : index
    %8 = vector.load %arg3[%c0_3, %c0_4] : memref<128x256xbf16, #tpu.memory_space<vmem>>, vector<128x256xbf16>
    %cst = arith.constant dense<0.000000e+00> : vector<32x256xf32>
    %9 = tpu.matmul %7, %8, %cst {dimension_numbers = #tpu.dot_dimension_numbers<[1], [0], [0], [1], [0, 0, 1, 1], [], []>} : vector<32x128xbf16>, vector<128x256xbf16>, vector<32x256xf32> -> vector<32x256xf32>
    %10 = vector.broadcast %2 : vector<1x256xf32> to vector<32x256xf32>
    %11 = arith.addf %9, %10 : vector<32x256xf32>
    %cst_5 = arith.constant 5.000000e-01 : f32
    %12 = vector.broadcast %cst_5 : f32 to vector<32x256xf32>
    %13 = arith.mulf %12, %11 : vector<32x256xf32>
    %14 = math.tanh %13 : vector<32x256xf32>
    %cst_6 = arith.constant 1.000000e+00 : f32
    %15 = vector.broadcast %cst_6 : f32 to vector<32x256xf32>
    %16 = arith.addf %14, %15 : vector<32x256xf32>
    %cst_7 = arith.constant 5.000000e-01 : f32
    %17 = vector.broadcast %cst_7 : f32 to vector<32x256xf32>
    %18 = arith.mulf %17, %16 : vector<32x256xf32>
    %19 = arith.mulf %11, %18 : vector<32x256xf32>
    %20 = arith.truncf %19 : vector<32x256xf32> to vector<32x256xbf16>
    %cst_8 = arith.constant 0.000000e+00 : f32
    %21 = vector.broadcast %cst_8 : f32 to vector<32x256xf32>
    %c0_9 = arith.constant 0 : index
    %c0_10 = arith.constant 0 : index
    %c0_11 = arith.constant 0 : index
    %22 = vector.load %arg2[%c0_9, %c0_10, %c0_11] : memref<3x32x32xbf16, #tpu.memory_space<vmem>>, vector<1x32x32xbf16>
    %23 = vector.shape_cast %22 : vector<1x32x32xbf16> to vector<32x32xbf16>
    %cst_12 = arith.constant dense<0.000000e+00> : vector<32x256xf32>
    %24 = tpu.matmul %23, %20, %cst_12 {dimension_numbers = #tpu.dot_dimension_numbers<[1], [0], [0], [1], [0, 0, 1, 1], [], []>} : vector<32x32xbf16>, vector<32x256xbf16>, vector<32x256xf32> -> vector<32x256xf32>
    %25 = arith.truncf %24 : vector<32x256xf32> to vector<32x256xbf16>
    %c0_13 = arith.constant 0 : index
    %c0_14 = arith.constant 0 : index
    %c0_15 = arith.constant 0 : index
    %26 = vector.load %arg4[%c0_13, %c0_14, %c0_15] : memref<3x256x256xbf16, #tpu.memory_space<vmem>>, vector<1x256x256xbf16>
    %27 = vector.shape_cast %26 : vector<1x256x256xbf16> to vector<256x256xbf16>
    %cst_16 = arith.constant dense<0.000000e+00> : vector<32x256xf32>
    %28 = tpu.matmul %25, %27, %cst_16 {dimension_numbers = #tpu.dot_dimension_numbers<[1], [0], [0], [1], [0, 0, 1, 1], [], []>} : vector<32x256xbf16>, vector<256x256xbf16>, vector<32x256xf32> -> vector<32x256xf32>
    %29 = arith.addf %21, %28 : vector<32x256xf32>
    %c1 = arith.constant 1 : index
    %c0_17 = arith.constant 0 : index
    %c0_18 = arith.constant 0 : index
    %30 = vector.load %arg2[%c1, %c0_17, %c0_18] : memref<3x32x32xbf16, #tpu.memory_space<vmem>>, vector<1x32x32xbf16>
    %31 = vector.shape_cast %30 : vector<1x32x32xbf16> to vector<32x32xbf16>
    %cst_19 = arith.constant dense<0.000000e+00> : vector<32x256xf32>
    %32 = tpu.matmul %31, %20, %cst_19 {dimension_numbers = #tpu.dot_dimension_numbers<[1], [0], [0], [1], [0, 0, 1, 1], [], []>} : vector<32x32xbf16>, vector<32x256xbf16>, vector<32x256xf32> -> vector<32x256xf32>
    %33 = arith.truncf %32 : vector<32x256xf32> to vector<32x256xbf16>
    %c1_20 = arith.constant 1 : index
    %c0_21 = arith.constant 0 : index
    %c0_22 = arith.constant 0 : index
    %34 = vector.load %arg4[%c1_20, %c0_21, %c0_22] : memref<3x256x256xbf16, #tpu.memory_space<vmem>>, vector<1x256x256xbf16>
    %35 = vector.shape_cast %34 : vector<1x256x256xbf16> to vector<256x256xbf16>
    %cst_23 = arith.constant dense<0.000000e+00> : vector<32x256xf32>
    %36 = tpu.matmul %33, %35, %cst_23 {dimension_numbers = #tpu.dot_dimension_numbers<[1], [0], [0], [1], [0, 0, 1, 1], [], []>} : vector<32x256xbf16>, vector<256x256xbf16>, vector<32x256xf32> -> vector<32x256xf32>
    %37 = arith.addf %29, %36 : vector<32x256xf32>
    %c2 = arith.constant 2 : index
    %c0_24 = arith.constant 0 : index
    %c0_25 = arith.constant 0 : index
    %38 = vector.load %arg2[%c2, %c0_24, %c0_25] : memref<3x32x32xbf16, #tpu.memory_space<vmem>>, vector<1x32x32xbf16>
    %39 = vector.shape_cast %38 : vector<1x32x32xbf16> to vector<32x32xbf16>
    %cst_26 = arith.constant dense<0.000000e+00> : vector<32x256xf32>
    %40 = tpu.matmul %39, %20, %cst_26 {dimension_numbers = #tpu.dot_dimension_numbers<[1], [0], [0], [1], [0, 0, 1, 1], [], []>} : vector<32x32xbf16>, vector<32x256xbf16>, vector<32x256xf32> -> vector<32x256xf32>
    %41 = arith.truncf %40 : vector<32x256xf32> to vector<32x256xbf16>
    %c2_27 = arith.constant 2 : index
    %c0_28 = arith.constant 0 : index
    %c0_29 = arith.constant 0 : index
    %42 = vector.load %arg4[%c2_27, %c0_28, %c0_29] : memref<3x256x256xbf16, #tpu.memory_space<vmem>>, vector<1x256x256xbf16>
    %43 = vector.shape_cast %42 : vector<1x256x256xbf16> to vector<256x256xbf16>
    %cst_30 = arith.constant dense<0.000000e+00> : vector<32x256xf32>
    %44 = tpu.matmul %41, %43, %cst_30 {dimension_numbers = #tpu.dot_dimension_numbers<[1], [0], [0], [1], [0, 0, 1, 1], [], []>} : vector<32x256xbf16>, vector<256x256xbf16>, vector<32x256xf32> -> vector<32x256xf32>
    %45 = arith.addf %37, %44 : vector<32x256xf32>
    %46 = vector.broadcast %3 : vector<1x256xf32> to vector<32x256xf32>
    %47 = arith.addf %45, %46 : vector<32x256xf32>
    %cst_31 = arith.constant 5.000000e-01 : f32
    %48 = vector.broadcast %cst_31 : f32 to vector<32x256xf32>
    %49 = arith.mulf %48, %47 : vector<32x256xf32>
    %50 = math.tanh %49 : vector<32x256xf32>
    %cst_32 = arith.constant 1.000000e+00 : f32
    %51 = vector.broadcast %cst_32 : f32 to vector<32x256xf32>
    %52 = arith.addf %50, %51 : vector<32x256xf32>
    %cst_33 = arith.constant 5.000000e-01 : f32
    %53 = vector.broadcast %cst_33 : f32 to vector<32x256xf32>
    %54 = arith.mulf %53, %52 : vector<32x256xf32>
    %55 = arith.mulf %47, %54 : vector<32x256xf32>
    %56 = tpu.iota {dimensions = array<i32: 0>} : vector<2x32xi32>
    %57 = tpu.iota {dimensions = array<i32: 1>} : vector<2x32xi32>
    %c16_i32 = arith.constant 16 : i32
    %58 = vector.broadcast %c16_i32 : i32 to vector<2x32xi32>
    %59 = arith.muli %56, %58 : vector<2x32xi32>
    %60 = arith.cmpi sge, %57, %59 : vector<2x32xi32>
    %c1_i32 = arith.constant 1 : i32
    %61 = vector.broadcast %c1_i32 : i32 to vector<2x32xi32>
    %62 = arith.addi %56, %61 : vector<2x32xi32>
    %c16_i32_34 = arith.constant 16 : i32
    %63 = vector.broadcast %c16_i32_34 : i32 to vector<2x32xi32>
    %64 = arith.muli %62, %63 : vector<2x32xi32>
    %65 = arith.cmpi slt, %57, %64 : vector<2x32xi32>
    %66 = arith.andi %60, %65 : vector<2x32xi1>
    %cst_35 = arith.constant 1.000000e+00 : f32
    %cst_36 = arith.constant 0.000000e+00 : f32
    %67 = vector.broadcast %cst_35 : f32 to vector<2x32xf32>
    %68 = vector.broadcast %cst_36 : f32 to vector<2x32xf32>
    %69 = arith.select %66, %67, %68 : vector<2x32xi1>, vector<2x32xf32>
    %cst_37 = arith.constant dense<0.000000e+00> : vector<2x256xf32>
    %70 = tpu.matmul %69, %55, %cst_37 {dimension_numbers = #tpu.dot_dimension_numbers<[1], [0], [0], [1], [0, 0, 1, 1], [], []>} : vector<2x32xf32>, vector<32x256xf32>, vector<2x256xf32> -> vector<2x256xf32>
    %cst_38 = arith.constant 3.906250e-03 : f32
    %71 = vector.broadcast %cst_38 : f32 to vector<2x256xf32>
    %72 = arith.mulf %70, %71 : vector<2x256xf32>
    %c0_39 = arith.constant 0 : index
    %c0_40 = arith.constant 0 : index
    %73 = vector.load %arg6[%c0_39, %c0_40] : memref<256x4xf32, #tpu.memory_space<vmem>>, vector<256x4xf32>
    %cst_41 = arith.constant dense<0.000000e+00> : vector<2x4xf32>
    %74 = tpu.matmul %72, %73, %cst_41 {dimension_numbers = #tpu.dot_dimension_numbers<[1], [0], [0], [1], [0, 0, 1, 1], [], []>} : vector<2x256xf32>, vector<256x4xf32>, vector<2x4xf32> -> vector<2x4xf32>
    %75 = vector.broadcast %5 : vector<1x4xf32> to vector<2x4xf32>
    %76 = arith.addf %74, %75 : vector<2x4xf32>
    %cst_42 = arith.constant 0.000000e+00 : f32
    %77 = vector.broadcast %cst_42 : f32 to vector<2x4xf32>
    %78 = arith.maximumf %76, %77 : vector<2x4xf32>
    %c0_43 = arith.constant 0 : index
    %c0_44 = arith.constant 0 : index
    %79 = vector.load %arg7[%c0_43, %c0_44] : memref<4x256xf32, #tpu.memory_space<vmem>>, vector<4x256xf32>
    %cst_45 = arith.constant dense<0.000000e+00> : vector<2x256xf32>
    %80 = tpu.matmul %78, %79, %cst_45 {dimension_numbers = #tpu.dot_dimension_numbers<[1], [0], [0], [1], [0, 0, 1, 1], [], []>} : vector<2x4xf32>, vector<4x256xf32>, vector<2x256xf32> -> vector<2x256xf32>
    %81 = vector.broadcast %6 : vector<1x256xf32> to vector<2x256xf32>
    %82 = arith.addf %80, %81 : vector<2x256xf32>
    %cst_46 = arith.constant 5.000000e-01 : f32
    %83 = vector.broadcast %cst_46 : f32 to vector<2x256xf32>
    %84 = arith.mulf %83, %82 : vector<2x256xf32>
    %85 = math.tanh %84 : vector<2x256xf32>
    %cst_47 = arith.constant 1.000000e+00 : f32
    %86 = vector.broadcast %cst_47 : f32 to vector<2x256xf32>
    %87 = arith.addf %85, %86 : vector<2x256xf32>
    %cst_48 = arith.constant 5.000000e-01 : f32
    %88 = vector.broadcast %cst_48 : f32 to vector<2x256xf32>
    %89 = arith.mulf %88, %87 : vector<2x256xf32>
    %90 = tpu.iota {dimensions = array<i32: 0>} : vector<32x2xi32>
    %91 = tpu.iota {dimensions = array<i32: 1>} : vector<32x2xi32>
    %c16_i32_49 = arith.constant 16 : i32
    %92 = vector.broadcast %c16_i32_49 : i32 to vector<32x2xi32>
    %93 = arith.muli %91, %92 : vector<32x2xi32>
    %94 = arith.cmpi sge, %90, %93 : vector<32x2xi32>
    %c1_i32_50 = arith.constant 1 : i32
    %95 = vector.broadcast %c1_i32_50 : i32 to vector<32x2xi32>
    %96 = arith.addi %91, %95 : vector<32x2xi32>
    %c16_i32_51 = arith.constant 16 : i32
    %97 = vector.broadcast %c16_i32_51 : i32 to vector<32x2xi32>
    %98 = arith.muli %96, %97 : vector<32x2xi32>
    %99 = arith.cmpi slt, %90, %98 : vector<32x2xi32>
    %100 = arith.andi %94, %99 : vector<32x2xi1>
    %cst_52 = arith.constant 1.000000e+00 : f32
    %cst_53 = arith.constant 0.000000e+00 : f32
    %101 = vector.broadcast %cst_52 : f32 to vector<32x2xf32>
    %102 = vector.broadcast %cst_53 : f32 to vector<32x2xf32>
    %103 = arith.select %100, %101, %102 : vector<32x2xi1>, vector<32x2xf32>
    %cst_54 = arith.constant dense<0.000000e+00> : vector<32x256xf32>
    %104 = tpu.matmul %103, %89, %cst_54 {dimension_numbers = #tpu.dot_dimension_numbers<[1], [0], [0], [1], [0, 0, 1, 1], [], []>} : vector<32x2xf32>, vector<2x256xf32>, vector<32x256xf32> -> vector<32x256xf32>
    %105 = arith.mulf %55, %104 : vector<32x256xf32>
    %106 = arith.truncf %105 : vector<32x256xf32> to vector<32x256xbf16>
    %c0_55 = arith.constant 0 : index
    %c0_56 = arith.constant 0 : index
    %107 = vector.load %arg5[%c0_55, %c0_56] : memref<256x128xbf16, #tpu.memory_space<vmem>>, vector<256x128xbf16>
    %cst_57 = arith.constant dense<0.000000e+00> : vector<32x128xf32>
    %108 = tpu.matmul %106, %107, %cst_57 {dimension_numbers = #tpu.dot_dimension_numbers<[1], [0], [0], [1], [0, 0, 1, 1], [], []>} : vector<32x256xbf16>, vector<256x128xbf16>, vector<32x128xf32> -> vector<32x128xf32>
    %109 = vector.broadcast %4 : vector<1x128xf32> to vector<32x128xf32>
    %110 = arith.addf %108, %109 : vector<32x128xf32>
    %111 = arith.addf %110, %0 : vector<32x128xf32>
    %c0_58 = arith.constant 0 : index
    %c0_59 = arith.constant 0 : index
    %112 = vector.load %arg9[%c0_58, %c0_59] : memref<32x128xf32, #tpu.memory_space<vmem>>, vector<32x128xf32>
    tpu.vector_store %arg9[%c0_58, %c0_59], %111 {strides = array<i32>} : memref<32x128xf32, #tpu.memory_space<vmem>>, vector<32x128xf32>,
    return
  }
  func.func @transform_0(%arg0: i32) -> (i32, i32) {
    %c0_i32 = arith.constant 0 : i32
    %c0_i32_0 = arith.constant 0 : i32
    return %arg0, %c0_i32 : i32, i32
  }
  func.func @transform_1(%arg0: i32) -> (i32, i32, i32) {
    %c0_i32 = arith.constant 0 : i32
    %c0_i32_0 = arith.constant 0 : i32
    %c0_i32_1 = arith.constant 0 : i32
    %c0_i32_2 = arith.constant 0 : i32
    return %c0_i32, %c0_i32_0, %c0_i32_1 : i32, i32, i32
  }
  func.func @transform_2(%arg0: i32) -> (i32, i32) {
    %c0_i32 = arith.constant 0 : i32
    %c0_i32_0 = arith.constant 0 : i32
    %c0_i32_1 = arith.constant 0 : i32
    return %c0_i32, %c0_i32_0 : i32, i32
  }
  func.func @transform_3(%arg0: i32) -> (i32, i32, i32) {
    %c0_i32 = arith.constant 0 : i32
    %c0_i32_0 = arith.constant 0 : i32
    %c0_i32_1 = arith.constant 0 : i32
    %c0_i32_2 = arith.constant 0 : i32
    return %c0_i32, %c0_i32_0, %c0_i32_1 : i32, i32, i32
  }
  func.func @transform_4(%arg0: i32) -> (i32, i32) {
    %c0_i32 = arith.constant 0 : i32
    %c0_i32_0 = arith.constant 0 : i32
    %c0_i32_1 = arith.constant 0 : i32
    return %c0_i32, %c0_i32_0 : i32, i32
  }
  func.func @transform_5(%arg0: i32) -> (i32, i32) {
    %c0_i32 = arith.constant 0 : i32
    %c0_i32_0 = arith.constant 0 : i32
    %c0_i32_1 = arith.constant 0 : i32
    return %c0_i32, %c0_i32_0 : i32, i32
  }
  func.func @transform_6(%arg0: i32) -> (i32, i32) {
    %c0_i32 = arith.constant 0 : i32
    %c0_i32_0 = arith.constant 0 : i32
    %c0_i32_1 = arith.constant 0 : i32
    return %c0_i32, %c0_i32_0 : i32, i32
  }
  func.func @transform_7(%arg0: i32) -> (i32, i32) {
    %c0_i32 = arith.constant 0 : i32
    %c0_i32_0 = arith.constant 0 : i32
    %c0_i32_1 = arith.constant 0 : i32
    return %c0_i32, %c0_i32_0 : i32, i32
  }
  func.func @transform_8(%arg0: i32) -> (i32, i32) {
    %c0_i32 = arith.constant 0 : i32
    %c0_i32_0 = arith.constant 0 : i32
    return %arg0, %c0_i32 : i32, i32
  }
}

</mosaic_0001>

<bundles_post_ra>
// kernel: tpu_custom_call.1
= control target key start
LH: loop header
LB: loop body
LE: loop exit
PB: predicated region body
PF: predicated region fallthrough
CT: control target
= control target key end

     0   :  { %13 = vsyncpa [#allocation3], 0  ;;  %s3026_s0 = inlined_call_operand.hbm [shape: f32[32,128], index: 0, kind: input, shape index: {}]   ;;  %s3027_s1 = inlined_call_operand.hbm [shape: bf16[3,32,32], index: 1, kind: input, shape index: {}]   ;;  %s3028_s2 = inlined_call_operand.vmem [shape: bf16[128,256], index: 2, kind: input, shape index: {}]   ;;  %s3029_s3 = inlined_call_operand.hbm [shape: bf16[3,256,256], index: 3, kind: input, shape index: {}]   ;;  %s3030_s4 = inlined_call_operand.vmem [shape: bf16[256,128], index: 4, kind: input, shape index: {}]   ;;  %s3031_s5 = inlined_call_operand.vmem [shape: f32[256,4], index: 5, kind: input, shape index: {}]   ;;  %s3032_s6 = inlined_call_operand.hbm [shape: f32[4,256], index: 6, kind: input, shape index: {}]   ;;  %s3033_s7 = inlined_call_operand.vmem [shape: f32[5,256], index: 7, kind: input, shape index: {}]   ;;  %s3034_s8 = inlined_call_operand.hbm [shape: f32[32,128], index: 8, kind: output, shape index: {}]  }
   0x1   :  { %14 = vsyncpa [#allocation6], 0 }
   0x2   :  { %15 = vsyncpa [#allocation9], 0 }
   0x3   :  { %16 = vsyncpa [#allocation4], 0  ;;  %s2553_s27 = smov [#allocation5]  }
   0x4   :  { %s34_s28 = sshll.u32 %s2553_s27, 4  ;;  %s35_s28 = int_to_ptr.vmem [resolvable:$true] %s34_s28 }
   0x5   :  { %s2453_s29 = scalar_lea.vmem %s35_s28, 768  ;;  %p2458_p1 = scmp.lt.s32.totalorder %s35_s28, %s35_s28 }
   0x6   :  { %p2454_p0 = scmp.ne.s32.totalorder %s35_s28, %s2453_s29  ;;  %p2459_p2 = scmp.lt.s32.totalorder %s2453_s29, %s2453_s29 }
   0x8   :  { %p2460_p3 = por %p2459_p2, %p2458_p1 }
   0xa   :  { %p2461_p4 = pnand %p2460_p3, %p2454_p0 }
   0xc   :  { %2464 = shalt.err (!%p2461_p4)
}
   0xd   :  { %s2554_s30 = smov 64   ;;  %s2555_s9 = smov 4  }
   0xe   :  { %40 = dma.hbm_to_vmem [thread:$0]  %s3027_s1, 768, %s35_s28, [#allocation6], %s2554_s30, %s2554_s30, %s2555_s9  }
   0xf   :  { %s2556_s12 = smov [#allocation2]  }
  0x10   :  { %s22_s13 = sshll.u32 %s2556_s12, 4  ;;  %s23_s13 = int_to_ptr.vmem [resolvable:$true] %s22_s13 }
  0x11   :  { %s2473_s14 = scalar_lea.vmem %s23_s13, 512  ;;  %p2478_p6 = scmp.lt.s32.totalorder %s23_s13, %s23_s13 }
  0x12   :  { %p2474_p5 = scmp.ne.s32.totalorder %s23_s13, %s2473_s14  ;;  %p2479_p7 = scmp.lt.s32.totalorder %s2473_s14, %s2473_s14 }
  0x14   :  { %p2480_p8 = por %p2479_p7, %p2478_p6 }
  0x16   :  { %p2481_p9 = pnand %p2480_p8, %p2474_p5 }
  0x18   :  { %2484 = shalt.err (!%p2481_p9)
}
  0x19   :  { %s2557_s15 = smov 128   ;;  %s2558_s16 = smov 8  }
  0x1a   :  { %28 = dma.hbm_to_vmem [thread:$0]  %s3026_s0, 512, %s23_s13, [#allocation3], %s2557_s15, %s2557_s15, %s2558_s16  }
  0x1b   :  { %s2559_s1 = smov [#allocation7]   ;;  %s2560_s20 = smov [#allocation8]  }
  0x1c   :  { %s48_s19 = sshll.u32 %s2559_s1, 4  ;;  %s65_s21 = sshll.u32 %s2560_s20, 4  ;;  %s49_s19 = int_to_ptr.vmem [resolvable:$true] %s48_s19  ;;  %s66_s21 = int_to_ptr.vmem [resolvable:$true] %s65_s21 }
  0x1d   :  { %s2493_s22 = scalar_lea.vmem %s49_s19, 12288  ;;  %p2498_p11 = scmp.lt.s32.totalorder %s49_s19, %s49_s19 }
  0x1e   :  { %p2494_p10 = scmp.ne.s32.totalorder %s49_s19, %s2493_s22  ;;  %p2499_p12 = scmp.lt.s32.totalorder %s2493_s22, %s2493_s22 }
  0x20   :  { %p2500_p13 = por %p2499_p12, %p2498_p11 }
  0x22   :  { %p2501_p0 = pnand %p2500_p13, %p2494_p10 }
  0x24   :  { %2504 = shalt.err (!%p2501_p0)
}
  0x25   :  { %54 = dma.hbm_to_vmem [thread:$0]  %s3029_s3, 12288, %s49_s19, [#allocation6], %s2557_s15, %s2557_s15, %s2558_s16  }
  0x26   :  { %s2513_s0 = scalar_lea.vmem %s66_s21, 128  ;;  %p2518_p2 = scmp.lt.s32.totalorder %s66_s21, %s66_s21 }
  0x27   :  { %p2514_p1 = scmp.ne.s32.totalorder %s66_s21, %s2513_s0  ;;  %p2519_p3 = scmp.lt.s32.totalorder %s2513_s0, %s2513_s0 }
  0x29   :  { %p2520_p4 = por %p2519_p3, %p2518_p2 }
  0x2b   :  { %p2521_p5 = pnand %p2520_p4, %p2514_p1 }
  0x2d   :  { %2524 = shalt.err (!%p2521_p5)
}
  0x2e   :  { %68 = dma.hbm_to_vmem [thread:$0]  %s3032_s6, 128, %s66_s21, [#allocation9]  }
  0x2f   :  { %2545 = dma.done.wait [#allocation3], 512  }
  0x30   :  { %2546 = vsyncadd [#allocation3], 4294966784 }
  0x31   :  { %2547 = dma.done.wait [#allocation6], 13056  }
  0x32   :  { %2548 = vsyncadd [#allocation6], 4294954240 }
  0x33   :  { %2549 = dma.done.wait [#allocation9], 128  }
  0x34   :  { %2550 = vsyncadd [#allocation9], 4294967168  ;;  %v2561_v0 = vmov 0   ;;  %v2212_v1 = vld [vmem:[%s3028_s2 + $0x74] ss:$8 sps:$4 sm:$0xff]   ;;  %v84_v17 = vld [vmem:[#allocation2] sm:$0xff]  ;;  %v108_v23 = vlaneseq }
  0x35   :  { %228 = vmatprep.mubr.bf16.mxu0 %v2561_v0  ;;  %346 = vmatprep.mubr.bf16.mxu1 %v2561_v0  ;;  %v2214_v2 = vld [vmem:[%s3028_s2 + $0x70] ss:$8 sps:$4 sm:$0xff]   ;;  %v2215_v3 = vld [vmem:[%s3028_s2 + $0x64] ss:$8 sps:$4 sm:$0xff]   ;;  %v2217_v4 = vld [vmem:[%s3028_s2 + $0x60] ss:$8 sps:$4 sm:$0xff]  }
  0x36   :  { %196 = vmatprep.subr.bf16.mxu0 %v2212_v1  ;;  %v2218_v5 = vld [vmem:[%s3028_s2 + $0x54] ss:$8 sps:$4 sm:$0xff]   ;;  %v2220_v6 = vld [vmem:[%s3028_s2 + $0x50] ss:$8 sps:$4 sm:$0xff]   ;;  %v2221_v7 = vld [vmem:[%s3028_s2 + $0x44] ss:$8 sps:$4 sm:$0xff]  }
  0x37   :  { %197 = vmatpush1.bf16.msra.mxu0 %v2214_v2  ;;  %v2223_v8 = vld [vmem:[%s3028_s2 + $0x40] ss:$8 sps:$4 sm:$0xff]   ;;  %v2224_v9 = vld [vmem:[%s3028_s2 + $0x34] ss:$8 sps:$4 sm:$0xff]   ;;  %v2226_v10 = vld [vmem:[%s3028_s2 + $0x30] ss:$8 sps:$4 sm:$0xff]  }
  0x38   :  { %198 = vmatprep.subr.bf16.mxu0 %v2215_v3  ;;  %v2227_v11 = vld [vmem:[%s3028_s2 + $0x24] ss:$8 sps:$4 sm:$0xff]   ;;  %v2229_v12 = vld [vmem:[%s3028_s2 + $0x20] ss:$8 sps:$4 sm:$0xff]   ;;  %v2230_v13 = vld [vmem:[%s3028_s2 + $0x14] ss:$8 sps:$4 sm:$0xff]  }
  0x39   :  { %v2232_v14 = vld [vmem:[%s3028_s2 + $0x10] ss:$8 sps:$4 sm:$0xff]   ;;  %v2233_v15 = vld [vmem:[%s3028_s2 + $0x4] ss:$8 sps:$4 sm:$0xff]   ;;  %v2235_v16 = vld [vmem:[%s3028_s2] ss:$8 sps:$4 sm:$0xff]  }
  0x3a   :  { %v85_v18 = vld [vmem:[#allocation2 + $0x8] sm:$0xff]  ;;  %v86_v20 = vld [vmem:[#allocation2 + $0x10] sm:$0xff]  ;;  %v87_v21 = vld [vmem:[#allocation2 + $0x18] sm:$0xff]  ;;  %v2679_v24 = vshrl.u32 %v108_v23, 7  ;;  %vm307_vm0 = vcmask 261120   ;;  %vm1537_vm4 = vcmask 1043456  }
  0x3b   :  { %199 = vmatpush1.bf16.msra.mxu0 %v2217_v4  ;;  %v90_v19 = vpack.c.bf16 %v85_v18, %v84_v17  ;;  %v91_v22 = vpack.c.bf16 %v87_v21, %v86_v20  ;;  %v2684_v25 = vld [vmem:[%s3033_s7 + $0x8] sm:$0x1f]  ;;  %v2293_v31 = vld [vmem:[#allocation7 + $0x64] ss:$8 sps:$4 sm:$0xff]   ;;  %v2291_v33 = vld [vmem:[#allocation7 + $0x60] ss:$8 sps:$4 sm:$0xff]  }
  0x3c   :  { %200 = vmatprep.subr.bf16.mxu0 %v2218_v5  ;;  %v110_v26 = vsub.s32 0, %v2679_v24  ;;  %v2288_v27 = vld [vmem:[#allocation7 + $0x70] ss:$8 sps:$4 sm:$0xff]   ;;  %v2290_v28 = vld [vmem:[#allocation7 + $0x74] ss:$8 sps:$4 sm:$0xff]   ;;  %vm1533_vm5 = vcmask 31744  }
  0x3d   :  { %v2691_v34 = vld [vmem:[%s3033_s7] sm:$0x1f]  ;;  %v2299_v42 = vld [vmem:[#allocation7 + $0x44] ss:$8 sps:$4 sm:$0xff]   ;;  %v2297_v50 = vld [vmem:[#allocation7 + $0x40] ss:$8 sps:$4 sm:$0xff]  }
  0x3e   :  { %v115_v30 = vrot.slane %v2684_v25, %v110_v26  ;;  %v2296_v35 = vld [vmem:[#allocation7 + $0x54] ss:$8 sps:$4 sm:$0xff]   ;;  %v111_v38 = vrot.slane %v2691_v34, %v110_v26  ;;  %v2294_v40 = vld [vmem:[#allocation7 + $0x50] ss:$8 sps:$4 sm:$0xff]   ;;  %v2305_v63 = vld [vmem:[#allocation7 + $0x24] ss:$8 sps:$4 sm:$0xff]  }
  0x3f   :  { %201 = vmatpush1.bf16.msra.mxu0 %v2220_v6  ;;  %v2302_v53 = vld [vmem:[#allocation7 + $0x34] ss:$8 sps:$4 sm:$0xff]   ;;  %v2300_v60 = vld [vmem:[#allocation7 + $0x30] ss:$8 sps:$4 sm:$0xff]   ;;  %v2303_v2 = vld [vmem:[#allocation7 + $0x20] ss:$8 sps:$4 sm:$0xff]  }
  0x40   :  { %202 = vmatprep.subr.bf16.mxu0 %v2221_v7  ;;  %v2308_v3 = vld [vmem:[#allocation7 + $0x14] ss:$8 sps:$4 sm:$0xff]   ;;  %v2306_v4 = vld [vmem:[#allocation7 + $0x10] ss:$8 sps:$4 sm:$0xff]   ;;  %v2311_v5 = vld [vmem:[#allocation7 + $0x4] ss:$8 sps:$4 sm:$0xff]  }
  0x41   :  { %v2312_v17 = vld [vmem:[#allocation7 + $0xf0] ss:$8 sps:$4 sm:$0xff]   ;;  %v2317_v21 = vld [vmem:[#allocation7 + $0xe4] ss:$8 sps:$4 sm:$0xff]   ;;  %vm1656_vm9 = vcmask 1041408   ;;  %vm1643_vm12 = vcmask 15360  }
  0x43   :  { %203 = vmatpush1.bf16.msra.mxu0 %v2223_v8  ;;  %v2309_v8 = vld [vmem:[#allocation7] ss:$8 sps:$4 sm:$0xff]  }
  0x44   :  { %204 = vmatprep.subr.bf16.mxu0 %v2224_v9 }
  0x47   :  { %205 = vmatpush1.bf16.msra.mxu0 %v2226_v10  ;;  %v2314_v10 = vld [vmem:[#allocation7 + $0xf4] ss:$8 sps:$4 sm:$0xff]  }
  0x48   :  { %206 = vmatprep.subr.bf16.mxu0 %v2227_v11 }
  0x4b   :  { %207 = vmatpush1.bf16.msra.mxu0 %v2229_v12 }
  0x4c   :  { %208 = vmatprep.subr.bf16.mxu0 %v2230_v13 }
  0x4f   :  { %209 = vmatpush1.bf16.msra.mxu0 %v2232_v14 }
  0x50   :  { %210 = vmatprep.subr.bf16.mxu0 %v2233_v15 }
  0x53   :  { %211 = vmatpush1.bf16.msra.mxu0 %v2235_v16 }
  0x54   :  { %887 = vmatprep.subr.bf16.mxu0 %v2290_v28 }
  0x56   :  { %229 = vmatmul.mubr.bf16.vlgmr.msra.gmra.mxu0 %v90_v19 }
  0x57   :  { %238 = vmatprep.mubr.bf16.mxu0 %v2561_v0  ;;  %888 = vmatpush1.bf16.msra.mxu0 %v2288_v27 }
  0x58   :  { %889 = vmatprep.subr.bf16.mxu0 %v2293_v31 }
  0x5b   :  { %890 = vmatpush1.bf16.msra.mxu0 %v2291_v33  ;;  %v2315_v33 = vld [vmem:[#allocation7 + $0xe0] ss:$8 sps:$4 sm:$0xff]  }
  0x5c   :  { %891 = vmatprep.subr.bf16.mxu0 %v2296_v35 }
  0x5e   :  { %239 = vmatmul.mubr.bf16.gmra.mxu0 %v91_v22 }
  0x5f   :  { %892 = vmatpush1.bf16.msra.mxu0 %v2294_v40 }
  0x60   :  { %893 = vmatprep.subr.bf16.mxu0 %v2299_v42 }
  0x63   :  { %894 = vmatpush1.bf16.msra.mxu0 %v2297_v50  ;;  %v2318_v50 = vld [vmem:[#allocation7 + $0xd0] ss:$8 sps:$4 sm:$0xff]  }
  0x64   :  { %895 = vmatprep.subr.bf16.mxu0 %v2302_v53 }
  0x67   :  { %896 = vmatpush1.bf16.msra.mxu0 %v2300_v60  ;;  %v2327_v60 = vld [vmem:[#allocation7 + $0xa0] ss:$8 sps:$4 sm:$0xff]  }
  0x68   :  { %897 = vmatprep.subr.bf16.mxu0 %v2305_v63  ;;  %v2238_v63 = vld [vmem:[#allocation7 + $0x170] ss:$8 sps:$4 sm:$0xff]  }
  0x6b   :  { %898 = vmatpush1.bf16.msra.mxu0 %v2303_v2  ;;  %v2242_v2 = vld [vmem:[#allocation7 + $0x160] ss:$8 sps:$4 sm:$0xff]  }
  0x6c   :  { %899 = vmatprep.subr.bf16.mxu0 %v2308_v3  ;;  %v2247_v3 = vld [vmem:[#allocation7 + $0x154] ss:$8 sps:$4 sm:$0xff]  }
  0x6f   :  { %900 = vmatpush1.bf16.msra.mxu0 %v2306_v4  ;;  %v2248_v4 = vld [vmem:[#allocation5 + $0x18] sm:$0xff]  }
  0x70   :  { %901 = vmatprep.subr.bf16.mxu0 %v2311_v5  ;;  %v2245_v5 = vld [vmem:[#allocation7 + $0x150] ss:$8 sps:$4 sm:$0xff]  }
  0x73   :  { %902 = vmatpush1.bf16.msra.mxu0 %v2309_v8  ;;  %v2254_v8 = vld [vmem:[#allocation7 + $0x134] ss:$8 sps:$4 sm:$0xff]  }
  0x74   :  { %903 = vmatprep.subr.bf16.mxu0 %v2314_v10  ;;  %v2257_v10 = vld [vmem:[#allocation7 + $0x124] ss:$8 sps:$4 sm:$0xff]  }
  0x77   :  { %904 = vmatpush2.bf16.msra.mxu0 %v2312_v17  ;;  %v2264_v17 = vld [vmem:[#allocation7 + $0x1f0] ss:$8 sps:$4 sm:$0xff]  }
  0x78   :  { %905 = vmatprep.subr.bf16.mxu0 %v2317_v21  ;;  %v2270_v21 = vld [vmem:[#allocation7 + $0x1d0] ss:$8 sps:$4 sm:$0xff]  }
  0x7b   :  { %906 = vmatpush2.bf16.msra.mxu0 %v2315_v33  ;;  %v2330_v33 = vld [vmem:[#allocation7 + $0x90] ss:$8 sps:$4 sm:$0xff]  }
 0x116   :  { %v230_v29 = vpop.f32.mrf.mxu0 }
 0x117   :  { %v2704_v48 = vadd.f32 %v230_v29, %v111_v38 }
 0x118   :  { %v232_v32 = vpop.f32.mrf.mxu0 }
 0x119   :  { %v2693_v36 = vadd.f32 %v232_v32, %v115_v30  ;;  %v249_v58 = vmul.f32 0.5, %v2704_v48 }
 0x11a   :  { %v234_v37 = vpop.f32.mrf.mxu0 }
 0x11b   :  { %v250_v43 = vmul.f32 0.5, %v2693_v36  ;;  %v2699_v44 = vadd.f32 %v234_v37, %v111_v38 }
 0x11c   :  { %v236_v39 = vpop.f32.mrf.mxu0 }
 0x11d   :  { %v2696_v41 = vadd.f32 %v236_v39, %v115_v30  ;;  %2403 = vtanh.f32 %v250_v43  ;;  %v251_v54 = vmul.f32 0.5, %v2699_v44 }
 0x11e   :  { %v240_v45 = vpop.f32.mrf.mxu0 }
 0x11f   :  { %v252_v46 = vmul.f32 0.5, %v2696_v41  ;;  %v2702_v47 = vadd.f32 %v240_v45, %v111_v38 }
 0x120   :  { %v242_v49 = vpop.f32.mrf.mxu0 }
 0x121   :  { %v253_v51 = vmul.f32 0.5, %v2702_v47  ;;  %v2707_v52 = vadd.f32 %v242_v49, %v115_v30  ;;  %2405 = vtanh.f32 %v252_v46 }
 0x122   :  { %v244_v55 = vpop.f32.mrf.mxu0 }
 0x123   :  { %v254_v56 = vmul.f32 0.5, %v2707_v52  ;;  %v245_v57 = vadd.f32 %v244_v55, %v111_v38  ;;  %2407 = vtanh.f32 %v253_v51  ;;  %v2320_v38 = vld [vmem:[#allocation7 + $0xd4] ss:$8 sps:$4 sm:$0xff]  }
 0x124   :  { %v246_v59 = vpop.f32.mrf.mxu0  ;;  %907 = vmatprep.subr.bf16.mxu0 %v2320_v38  ;;  %v2287_v38 = vld [vmem:[#allocation7 + $0x184] ss:$8 sps:$4 sm:$0xff]  }
 0x125   :  { %2409 = vtanh.f32 %v254_v56  ;;  %v255_v61 = vmul.f32 0.5, %v245_v57  ;;  %v247_v62 = vadd.f32 %v246_v59, %v115_v30  ;;  %908 = vmatpush2.bf16.msra.mxu0 %v2318_v50  ;;  %v2240_v59 = vld [vmem:[#allocation7 + $0x174] ss:$8 sps:$4 sm:$0xff]  }
 0x126   :  { %2411 = vtanh.f32 %v251_v54  ;;  %v2323_v54 = vld [vmem:[#allocation7 + $0xc4] ss:$8 sps:$4 sm:$0xff]  }
 0x127   :  { %2413 = vtanh.f32 %v255_v61  ;;  %v256_v1 = vmul.f32 0.5, %v247_v62  ;;  %909 = vmatprep.subr.bf16.mxu0 %v2323_v54  ;;  %v2237_v61 = vld [vmem:[#allocation5 + $0x8] sm:$0xff]  }
 0x128   :  { %2415 = vtanh.f32 %v249_v58  ;;  %v2236_v58 = vld [vmem:[#allocation5] sm:$0xff]  }
 0x129   :  { %2417 = vtanh.f32 %v256_v1  ;;  %v2244_v1 = vld [vmem:[#allocation7 + $0x164] ss:$8 sps:$4 sm:$0xff]  }
 0x12a   :  { %v2404_v6 = vpop.eup %2403 }
 0x12b   :  { %v266_v19 = vadd.f32 1.0, %v2404_v6  ;;  %v2251_v6 = vld [vmem:[#allocation7 + $0x144] ss:$8 sps:$4 sm:$0xff]  }
 0x12d   :  { %v274_v35 = vmul.f32 0.5, %v266_v19  ;;  %v2267_v19 = vld [vmem:[#allocation7 + $0x1e0] ss:$8 sps:$4 sm:$0xff]  }
 0x12e   :  { %v2406_v7 = vpop.eup %2405 }
 0x12f   :  { %v268_v13 = vadd.f32 1.0, %v2406_v7  ;;  %v282_v51 = vmul.f32 %v274_v35, %v2693_v36  ;;  %v2326_v36 = vld [vmem:[#allocation7 + $0xb4] ss:$8 sps:$4 sm:$0xff]   ;;  %v2249_v7 = vld [vmem:[#allocation7 + $0x140] ss:$8 sps:$4 sm:$0xff]  }
 0x130   :  { %v2408_v9 = vpop.eup %2407  ;;  %v2282_v35 = vld [vmem:[#allocation7 + $0x190] ss:$8 sps:$4 sm:$0xff]  }
 0x131   :  { %v269_v16 = vadd.f32 1.0, %v2408_v9  ;;  %v276_v27 = vmul.f32 0.5, %v268_v13  ;;  %v2252_v9 = vld [vmem:[#allocation7 + $0x130] ss:$8 sps:$4 sm:$0xff]  }
 0x132   :  { %v2410_v11 = vpop.eup %2409  ;;  %v2258_v13 = vld [vmem:[#allocation7 + $0x110] ss:$8 sps:$4 sm:$0xff]  }
 0x133   :  { %v2412_v12 = vpop.eup %2411  ;;  %v270_v14 = vadd.f32 1.0, %v2410_v11  ;;  %v277_v32 = vmul.f32 0.5, %v269_v16  ;;  %v284_v42 = vmul.f32 %v276_v27, %v2696_v41  ;;  %v2255_v11 = vld [vmem:[#allocation7 + $0x120] ss:$8 sps:$4 sm:$0xff]   ;;  %v2266_v16 = vld [vmem:[#allocation7 + $0x1f4] ss:$8 sps:$4 sm:$0xff]  }
 0x134   :  { %v2414_v15 = vpop.eup %2413  ;;  %v267_v26 = vadd.f32 1.0, %v2412_v12  ;;  %v2260_v12 = vld [vmem:[#allocation7 + $0x114] ss:$8 sps:$4 sm:$0xff]  }
 0x135   :  { %v2416_v18 = vpop.eup %2415  ;;  %v271_v20 = vadd.f32 1.0, %v2414_v15  ;;  %v278_v28 = vmul.f32 0.5, %v270_v14  ;;  %v285_v49 = vmul.f32 %v277_v32, %v2702_v47  ;;  %v2722_v41 = vpack.c.bf16 %v284_v42, %v282_v51  ;;  %v2321_v47 = vld [vmem:[#allocation7 + $0xc0] ss:$8 sps:$4 sm:$0xff]   ;;  %v2263_v14 = vld [vmem:[#allocation7 + $0x104] ss:$8 sps:$4 sm:$0xff]  }
 0x136   :  { %v2418_v22 = vpop.eup %2417  ;;  %v265_v31 = vadd.f32 1.0, %v2416_v18  ;;  %v275_v39 = vmul.f32 0.5, %v267_v26  ;;  %910 = vmatpush2.bf16.msra.mxu0 %v2321_v47  ;;  %v2261_v15 = vld [vmem:[#allocation7 + $0x100] ss:$8 sps:$4 sm:$0xff]   ;;  %v2269_v18 = vld [vmem:[#allocation7 + $0x1e4] ss:$8 sps:$4 sm:$0xff]  }
 0x137   :  { %v279_v29 = vmul.f32 0.5, %v271_v20  ;;  %v272_v30 = vadd.f32 1.0, %v2418_v22  ;;  %v286_v43 = vmul.f32 %v278_v28, %v2707_v52  ;;  %911 = vmatprep.subr.bf16.mxu0 %v2326_v36  ;;  %v2272_v20 = vld [vmem:[#allocation7 + $0x1d4] ss:$8 sps:$4 sm:$0xff]   ;;  %v2275_v22 = vld [vmem:[#allocation7 + $0x1c4] ss:$8 sps:$4 sm:$0xff]  }
 0x138   :  { %v273_v46 = vmul.f32 0.5, %v265_v31  ;;  %v283_v55 = vmul.f32 %v275_v39, %v2699_v44  ;;  %v2324_v44 = vld [vmem:[#allocation7 + $0xb0] ss:$8 sps:$4 sm:$0xff]   ;;  %v2273_v26 = vld [vmem:[#allocation7 + $0x1c0] ss:$8 sps:$4 sm:$0xff]  }
 0x139   :  { %v280_v37 = vmul.f32 0.5, %v272_v30  ;;  %v287_v40 = vmul.f32 %v279_v29, %v245_v57  ;;  %v2278_v27 = vld [vmem:[#allocation7 + $0x1b4] ss:$8 sps:$4 sm:$0xff]   ;;  %v2276_v28 = vld [vmem:[#allocation7 + $0x1b0] ss:$8 sps:$4 sm:$0xff]  }
 0x13a   :  { %v281_v52 = vmul.f32 %v273_v46, %v2704_v48  ;;  %v2329_v48 = vld [vmem:[#allocation7 + $0xa4] ss:$8 sps:$4 sm:$0xff]   ;;  %912 = vmatpush2.bf16.msra.mxu0 %v2324_v44  ;;  %v2279_v30 = vld [vmem:[#allocation7 + $0x1a0] ss:$8 sps:$4 sm:$0xff]   ;;  %v2332_v31 = vld [vmem:[#allocation7 + $0x94] ss:$8 sps:$4 sm:$0xff]  }
 0x13b   :  { %v288_v45 = vmul.f32 %v280_v37, %v247_v62  ;;  %v2719_v56 = vpack.c.bf16 %v287_v40, %v285_v49  ;;  %913 = vmatprep.subr.bf16.mxu0 %v2329_v48  ;;  %v2241_v62 = vld [vmem:[#allocation5 + $0x10] sm:$0xff]   ;;  %v2284_v32 = vld [vmem:[#allocation7 + $0x194] ss:$8 sps:$4 sm:$0xff]   ;;  %v2338_v51 = vld [vmem:[#allocation7 + $0x270] ss:$8 sps:$4 sm:$0xff]  }
 0x13c   :  { %v2727_v57 = vpack.c.bf16 %v283_v55, %v281_v52  ;;  %v2281_v29 = vld [vmem:[#allocation7 + $0x1a4] ss:$8 sps:$4 sm:$0xff]   ;;  %v2333_v39 = vld [vmem:[#allocation7 + $0x80] ss:$8 sps:$4 sm:$0xff]   ;;  %v2340_v42 = vld [vmem:[#allocation7 + $0x274] ss:$8 sps:$4 sm:$0xff]  }
 0x13d   :  { %v2716_v53 = vpack.c.bf16 %v288_v45, %v286_v43  ;;  %v2335_v37 = vld [vmem:[#allocation7 + $0x84] ss:$8 sps:$4 sm:$0xff]   ;;  %v2285_v40 = vld [vmem:[#allocation7 + $0x180] ss:$8 sps:$4 sm:$0xff]   ;;  %v2346_v44 = vld [vmem:[#allocation7 + $0x254] ss:$8 sps:$4 sm:$0xff]  }
 0x13e   :  { %914 = vmatpush2.bf16.msra.mxu0 %v2327_v60  ;;  %v2343_v52 = vld [vmem:[#allocation7 + $0x264] ss:$8 sps:$4 sm:$0xff]   ;;  %v2341_v36 = vld [vmem:[#allocation7 + $0x260] ss:$8 sps:$4 sm:$0xff]  }
 0x13f   :  { %326 = vmatprep.subr.bf16.mxu1 %v2716_v53  ;;  %915 = vmatprep.subr.bf16.mxu0 %v2332_v31  ;;  %v2379_v31 = vld [vmem:[#allocation7 + $0x2a4] ss:$8 sps:$4 sm:$0xff]  }
 0x140   :  { %327 = vmatpush1.bf16.msra.mxu1 %v2719_v56 }
 0x141   :  { %328 = vmatprep.subr.bf16.mxu1 %v2722_v41 }
 0x142   :  { %916 = vmatpush2.bf16.msra.mxu0 %v2330_v33  ;;  %v2382_v33 = vld [vmem:[#allocation7 + $0x294] ss:$8 sps:$4 sm:$0xff]  }
 0x143   :  { %917 = vmatprep.subr.bf16.mxu0 %v2335_v37  ;;  %v2385_v37 = vld [vmem:[#allocation7 + $0x284] ss:$8 sps:$4 sm:$0xff]  }
 0x144   :  { %329 = vmatpush1.bf16.msra.mxu1 %v2727_v57 }
 0x145   :  { %436 = vmatprep.subr.bf16.mxu1 %v2716_v53 }
 0x146   :  { %918 = vmatpush2.bf16.msra.mxu0 %v2333_v39 }
 0x147   :  { %1990 = vmatmul.mubr.msk.bf16.vlgmr.msra.gmra.mxu1 %vm307_vm0, %v2236_v58  ;;  %1211 = vmatprep.subr.bf16.mxu0 %v2340_v42 }
 0x148   :  { %437 = vmatpush1.bf16.msra.mxu1 %v2719_v56  ;;  %356 = vmatprep.mubr.bf16.mxu1 %v2561_v0 }
 0x149   :  { %438 = vmatprep.subr.bf16.mxu1 %v2722_v41 }
 0x14c   :  { %439 = vmatpush1.bf16.msra.mxu1 %v2727_v57 }
 0x14d   :  { %674 = vmatprep.subr.bf16.mxu1 %v2240_v59  ;;  %v2344_v59 = vld [vmem:[#allocation7 + $0x250] ss:$8 sps:$4 sm:$0xff]  }
 0x14f   :  { %1991 = vmatmul.mubr.msk.bf16.gmra.mxu1 %vm307_vm0, %v2237_v61 }
 0x150   :  { %456 = vmatprep.mubr.bf16.mxu1 %v2561_v0 }
 0x157   :  { %1994 = vmatmul.mubr.msk.bf16.vlgmr.msra.gmra.mxu1 %vm307_vm0, %v2241_v62  ;;  %v2349_v62 = vld [vmem:[#allocation7 + $0x244] ss:$8 sps:$4 sm:$0xff]  }
 0x158   :  { %675 = vmatpush1.bf16.msra.mxu1 %v2238_v63  ;;  %466 = vmatprep.mubr.bf16.mxu1 %v2561_v0 }
 0x159   :  { %676 = vmatprep.subr.bf16.mxu1 %v2244_v1  ;;  %v2347_v1 = vld [vmem:[#allocation7 + $0x240] ss:$8 sps:$4 sm:$0xff]  }
 0x15c   :  { %677 = vmatpush1.bf16.msra.mxu1 %v2242_v2 }
 0x15d   :  { %678 = vmatprep.subr.bf16.mxu1 %v2247_v3  ;;  %v2352_v3 = vld [vmem:[#allocation7 + $0x234] ss:$8 sps:$4 sm:$0xff]  }
 0x15f   :  { %1995 = vmatmul.mubr.msk.bf16.gmra.mxu1 %vm307_vm0, %v2248_v4 }
 0x160   :  { %679 = vmatpush1.bf16.msra.mxu1 %v2245_v5 }
 0x161   :  { %680 = vmatprep.subr.bf16.mxu1 %v2251_v6  ;;  %v2350_v6 = vld [vmem:[#allocation7 + $0x230] ss:$8 sps:$4 sm:$0xff]  }
 0x164   :  { %681 = vmatpush1.bf16.msra.mxu1 %v2249_v7 }
 0x165   :  { %682 = vmatprep.subr.bf16.mxu1 %v2254_v8 }
 0x168   :  { %683 = vmatpush1.bf16.msra.mxu1 %v2252_v9  ;;  %v2355_v9 = vld [vmem:[#allocation7 + $0x224] ss:$8 sps:$4 sm:$0xff]  }
 0x169   :  { %684 = vmatprep.subr.bf16.mxu1 %v2257_v10 }
 0x16c   :  { %685 = vmatpush1.bf16.msra.mxu1 %v2255_v11  ;;  %v2353_v11 = vld [vmem:[#allocation7 + $0x220] ss:$8 sps:$4 sm:$0xff]  }
 0x16d   :  { %686 = vmatprep.subr.bf16.mxu1 %v2260_v12 }
 0x170   :  { %687 = vmatpush1.bf16.msra.mxu1 %v2258_v13 }
 0x171   :  { %688 = vmatprep.subr.bf16.mxu1 %v2263_v14 }
 0x174   :  { %689 = vmatpush1.bf16.msra.mxu1 %v2261_v15 }
 0x175   :  { %690 = vmatprep.subr.bf16.mxu1 %v2266_v16  ;;  %v2336_v16 = vld [vmem:[#allocation5 + $0x20] sm:$0xff]  }
 0x178   :  { %691 = vmatpush2.bf16.msra.mxu1 %v2264_v17  ;;  %v2356_v17 = vld [vmem:[#allocation7 + $0x210] ss:$8 sps:$4 sm:$0xff]  }
 0x179   :  { %692 = vmatprep.subr.bf16.mxu1 %v2269_v18  ;;  %v2361_v18 = vld [vmem:[#allocation7 + $0x204] ss:$8 sps:$4 sm:$0xff]  }
 0x17c   :  { %693 = vmatpush2.bf16.msra.mxu1 %v2267_v19  ;;  %v2364_v19 = vld [vmem:[#allocation7 + $0x2f4] ss:$8 sps:$4 sm:$0xff]  }
 0x17d   :  { %694 = vmatprep.subr.bf16.mxu1 %v2272_v20  ;;  %v2362_v20 = vld [vmem:[#allocation7 + $0x2f0] ss:$8 sps:$4 sm:$0xff]  }
 0x180   :  { %695 = vmatpush2.bf16.msra.mxu1 %v2270_v21  ;;  %v2367_v21 = vld [vmem:[#allocation7 + $0x2e4] ss:$8 sps:$4 sm:$0xff]  }
 0x181   :  { %696 = vmatprep.subr.bf16.mxu1 %v2275_v22  ;;  %v2365_v22 = vld [vmem:[#allocation7 + $0x2e0] ss:$8 sps:$4 sm:$0xff]  }
 0x184   :  { %697 = vmatpush2.bf16.msra.mxu1 %v2273_v26  ;;  %v2368_v26 = vld [vmem:[#allocation7 + $0x2d0] ss:$8 sps:$4 sm:$0xff]  }
 0x185   :  { %698 = vmatprep.subr.bf16.mxu1 %v2278_v27  ;;  %v2373_v27 = vld [vmem:[#allocation7 + $0x2c4] ss:$8 sps:$4 sm:$0xff]  }
 0x188   :  { %699 = vmatpush2.bf16.msra.mxu1 %v2276_v28  ;;  %v2371_v28 = vld [vmem:[#allocation7 + $0x2c0] ss:$8 sps:$4 sm:$0xff]  }
 0x189   :  { %700 = vmatprep.subr.bf16.mxu1 %v2281_v29  ;;  %v2376_v29 = vld [vmem:[#allocation7 + $0x2b4] ss:$8 sps:$4 sm:$0xff]  }
 0x18c   :  { %701 = vmatpush2.bf16.msra.mxu1 %v2279_v30  ;;  %v2374_v30 = vld [vmem:[#allocation7 + $0x2b0] ss:$8 sps:$4 sm:$0xff]  }
 0x18d   :  { %702 = vmatprep.subr.bf16.mxu1 %v2284_v32  ;;  %v2377_v32 = vld [vmem:[#allocation7 + $0x2a0] ss:$8 sps:$4 sm:$0xff]  }
 0x190   :  { %703 = vmatpush2.bf16.msra.mxu1 %v2282_v35  ;;  %v2380_v35 = vld [vmem:[#allocation7 + $0x290] ss:$8 sps:$4 sm:$0xff]  }
 0x191   :  { %704 = vmatprep.subr.bf16.mxu1 %v2287_v38  ;;  %v2383_v38 = vld [vmem:[#allocation7 + $0x280] ss:$8 sps:$4 sm:$0xff]  }
 0x194   :  { %705 = vmatpush2.bf16.msra.mxu1 %v2285_v40 }
 0x195   :  { %973 = vmatprep.subr.bf16.mxu1 %v2716_v53 }
 0x207   :  { %v348_v43 = vpop.f32.mrf.mxu1 }
 0x209   :  { %v350_v45 = vpop.f32.mrf.mxu1 }
 0x20b   :  { %v352_v46 = vpop.f32.mrf.mxu1 }
 0x20c   :  { %v367_v54 = vpack.c.bf16 %v352_v46, %v348_v43 }
 0x20d   :  { %v354_v49 = vpop.f32.mrf.mxu1 }
 0x20e   :  { %v368_v50 = vpack.c.bf16 %v354_v49, %v350_v45 }
 0x20f   :  { %v358_v55 = vpop.f32.mrf.mxu1 }
 0x210   :  { %919 = vmatprep.mubr.bf16.mxu0 %v368_v50 }
 0x211   :  { %v360_v47 = vpop.f32.mrf.mxu1  ;;  %920 = vmatmul.mubr.bf16.vlgmr.msra.gmra.mxu0 %v367_v54 }
 0x212   :  { %1212 = vmatpush1.bf16.msra.mxu0 %v2338_v51 }
 0x213   :  { %v362_v58 = vpop.f32.mrf.mxu1  ;;  %1213 = vmatprep.subr.bf16.mxu0 %v2343_v52 }
 0x214   :  { %v369_v60 = vpack.c.bf16 %v362_v58, %v358_v55 }
 0x215   :  { %v364_v53 = vpop.f32.mrf.mxu1 }
 0x216   :  { %v370_v48 = vpack.c.bf16 %v364_v53, %v360_v47  ;;  %1214 = vmatpush1.bf16.msra.mxu0 %v2341_v36 }
 0x217   :  { %v458_v61 = vpop.f32.mrf.mxu1  ;;  %1215 = vmatprep.subr.bf16.mxu0 %v2346_v44 }
 0x218   :  { %929 = vmatprep.mubr.bf16.mxu0 %v370_v48 }
 0x219   :  { %v460_v63 = vpop.f32.mrf.mxu1  ;;  %930 = vmatmul.mubr.bf16.gmra.mxu0 %v369_v60 }
 0x21a   :  { %1216 = vmatpush1.bf16.msra.mxu0 %v2344_v59 }
 0x21b   :  { %v462_v2 = vpop.f32.mrf.mxu1  ;;  %1217 = vmatprep.subr.bf16.mxu0 %v2349_v62 }
 0x21c   :  { %v477_v7 = vpack.c.bf16 %v462_v2, %v458_v61  ;;  %v2562_v61 = vmov 0.0  }
 0x21d   :  { %v464_v4 = vpop.f32.mrf.mxu1 }
 0x21e   :  { %v478_v5 = vpack.c.bf16 %v464_v4, %v460_v63  ;;  %1218 = vmatpush1.bf16.msra.mxu0 %v2347_v1 }
 0x21f   :  { %v468_v8 = vpop.f32.mrf.mxu1  ;;  %1219 = vmatprep.subr.bf16.mxu0 %v2352_v3 }
 0x220   :  { %706 = vmatprep.mubr.bf16.mxu1 %v478_v5 }
 0x221   :  { %v470_v10 = vpop.f32.mrf.mxu1  ;;  %707 = vmatmul.mubr.bf16.vlgmr.msra.gmra.mxu1 %v477_v7 }
 0x222   :  { %974 = vmatpush1.bf16.msra.mxu1 %v2719_v56  ;;  %1220 = vmatpush1.bf16.msra.mxu0 %v2350_v6  ;;  %v2337_v56 = vld [vmem:[#allocation5 + $0x28] sm:$0xff]  }
 0x223   :  { %975 = vmatprep.subr.bf16.mxu1 %v2722_v41  ;;  %v472_v12 = vpop.f32.mrf.mxu1  ;;  %1221 = vmatprep.subr.bf16.mxu0 %v2355_v9  ;;  %v2358_v41 = vld [vmem:[#allocation7 + $0x214] ss:$8 sps:$4 sm:$0xff]   ;;  %v1274_v9 = vsub.s32 1, %v2679_v24 }
 0x224   :  { %v479_v15 = vpack.c.bf16 %v472_v12, %v468_v8 }
 0x225   :  { %v474_v13 = vpop.f32.mrf.mxu1  ;;  %v1279_v12 = vrot.slane %v2684_v25, %v1274_v9 }
 0x226   :  { %v480_v14 = vpack.c.bf16 %v474_v13, %v470_v10  ;;  %976 = vmatpush1.bf16.msra.mxu1 %v2727_v57  ;;  %1222 = vmatpush1.bf16.msra.mxu0 %v2353_v11  ;;  %v2359_v57 = vld [vmem:[#allocation7 + $0x200] ss:$8 sps:$4 sm:$0xff]  }
 0x227   :  { %1223 = vmatprep.subr.bf16.mxu0 %v2358_v41 }
 0x228   :  { %716 = vmatprep.mubr.bf16.mxu1 %v480_v14 }
 0x229   :  { %717 = vmatmul.mubr.bf16.gmra.mxu1 %v479_v15 }
 0x22a   :  { %993 = vmatprep.mubr.bf16.mxu1 %v2561_v0  ;;  %1224 = vmatpush1.bf16.msra.mxu0 %v2356_v17 }
 0x22b   :  { %1225 = vmatprep.subr.bf16.mxu0 %v2361_v18 }
 0x22e   :  { %1226 = vmatpush1.bf16.msra.mxu0 %v2359_v57 }
 0x22f   :  { %1227 = vmatprep.subr.bf16.mxu0 %v2364_v19 }
 0x231   :  { %2062 = vmatmul.mubr.msk.bf16.vlgmr.msra.gmra.mxu1 %vm307_vm0, %v2336_v16 }
 0x232   :  { %1003 = vmatprep.mubr.bf16.mxu1 %v2561_v0  ;;  %1228 = vmatpush2.bf16.msra.mxu0 %v2362_v20  ;;  %v2370_v0 = vld [vmem:[#allocation7 + $0x2d4] ss:$8 sps:$4 sm:$0xff]  }
 0x233   :  { %1229 = vmatprep.subr.bf16.mxu0 %v2367_v21  ;;  %v1275_v21 = vrot.slane %v2691_v34, %v1274_v9 }
 0x236   :  { %1230 = vmatpush2.bf16.msra.mxu0 %v2365_v22 }
 0x237   :  { %1231 = vmatprep.subr.bf16.mxu0 %v2370_v0 }
 0x239   :  { %2063 = vmatmul.mubr.msk.bf16.gmra.mxu1 %vm307_vm0, %v2337_v56 }
 0x23a   :  { %1232 = vmatpush2.bf16.msra.mxu0 %v2368_v26  ;;  %1406 = vmatprep.mubr.f32.mxu1 %v2562_v61 }
 0x23b   :  { %1233 = vmatprep.subr.bf16.mxu0 %v2373_v27 }
 0x23e   :  { %1234 = vmatpush2.bf16.msra.mxu0 %v2371_v28 }
 0x23f   :  { %1235 = vmatprep.subr.bf16.mxu0 %v2376_v29 }
 0x242   :  { %1236 = vmatpush2.bf16.msra.mxu0 %v2374_v30 }
 0x243   :  { %1237 = vmatprep.subr.bf16.mxu0 %v2379_v31 }
 0x246   :  { %1238 = vmatpush2.bf16.msra.mxu0 %v2377_v32 }
 0x247   :  { %1239 = vmatprep.subr.bf16.mxu0 %v2382_v33 }
 0x24a   :  { %1240 = vmatpush2.bf16.msra.mxu0 %v2380_v35 }
 0x24b   :  { %1241 = vmatprep.subr.bf16.mxu0 %v2385_v37 }
 0x24e   :  { %1242 = vmatpush2.bf16.msra.mxu0 %v2383_v38 }
 0x2d1   :  { %v921_v62 = vpop.f32.mrf.mxu0 }
 0x2d3   :  { %v923_v63 = vpop.f32.mrf.mxu0 }
 0x2d5   :  { %v925_v1 = vpop.f32.mrf.mxu0 }
 0x2d7   :  { %v927_v2 = vpop.f32.mrf.mxu0 }
 0x2d9   :  { %v931_v3 = vpop.f32.mrf.mxu0 }
 0x2db   :  { %v933_v4 = vpop.f32.mrf.mxu0 }
 0x2dd   :  { %v935_v5 = vpop.f32.mrf.mxu0 }
 0x2df   :  { %v937_v6 = vpop.f32.mrf.mxu0 }
 0x2e1   :  { %v708_v39 = vpop.f32.mrf.mxu1 }
 0x2e2   :  { %v922_v18 = vadd.f32 %v921_v62, %v708_v39 }
 0x2e3   :  { %v710_v40 = vpop.f32.mrf.mxu1 }
 0x2e4   :  { %v924_v8 = vadd.f32 %v923_v63, %v710_v40 }
 0x2e5   :  { %v712_v42 = vpop.f32.mrf.mxu1 }
 0x2e6   :  { %v926_v15 = vadd.f32 %v925_v1, %v712_v42 }
 0x2e7   :  { %v714_v43 = vpop.f32.mrf.mxu1 }
 0x2e8   :  { %v928_v14 = vadd.f32 %v927_v2, %v714_v43 }
 0x2e9   :  { %v718_v45 = vpop.f32.mrf.mxu1 }
 0x2ea   :  { %v932_v56 = vadd.f32 %v931_v3, %v718_v45  ;;  %v2764_v3 = vand.u32 127, %v108_v23  ;;  %v2389_v23 = vld [vmem:[%s3030_s4 + $0x70] sm:$0xff]  }
 0x2eb   :  { %v720_v46 = vpop.f32.mrf.mxu1 }
 0x2ec   :  { %v934_v20 = vadd.f32 %v933_v4, %v720_v46 }
 0x2ed   :  { %v722_v49 = vpop.f32.mrf.mxu1 }
 0x2ee   :  { %v936_v25 = vadd.f32 %v935_v5, %v722_v49 }
 0x2ef   :  { %v724_v50 = vpop.f32.mrf.mxu1 }
 0x2f0   :  { %v938_v35 = vadd.f32 %v937_v6, %v724_v50  ;;  %v1332_v6 = vmul.u32 16, %v2679_v24 }
 0x2f1   :  { %v995_v51 = vpop.f32.mrf.mxu1 }
 0x2f2   :  { %vm2772_vm1 = vcmp.ge.s32.totalorder %v2764_v3, %v1332_v6 }
 0x2f3   :  { %v997_v54 = vpop.f32.mrf.mxu1 }
 0x2f5   :  { %v999_v55 = vpop.f32.mrf.mxu1 }
 0x2f6   :  { %v1014_v36 = vpack.c.bf16 %v999_v55, %v995_v51 }
 0x2f7   :  { %v1001_v52 = vpop.f32.mrf.mxu1 }
 0x2f8   :  { %v1015_v47 = vpack.c.bf16 %v1001_v52, %v997_v54 }
 0x2f9   :  { %v1005_v58 = vpop.f32.mrf.mxu1 }
 0x2fa   :  { %1243 = vmatprep.mubr.bf16.mxu0 %v1015_v47 }
 0x2fb   :  { %v1007_v44 = vpop.f32.mrf.mxu1  ;;  %1244 = vmatmul.mubr.bf16.vlgmr.msra.gmra.mxu0 %v1014_v36 }
 0x2fd   :  { %v1009_v53 = vpop.f32.mrf.mxu1 }
 0x2fe   :  { %v1016_v60 = vpack.c.bf16 %v1009_v53, %v1005_v58 }
 0x2ff   :  { %v1011_v48 = vpop.f32.mrf.mxu1 }
 0x300   :  { %v1017_v59 = vpack.c.bf16 %v1011_v48, %v1007_v44  ;;  %v1334_v44 = vadd.s32 1, %v2679_v24 }
 0x302   :  { %1253 = vmatprep.mubr.bf16.mxu0 %v1017_v59 }
 0x303   :  { %1254 = vmatmul.mubr.bf16.gmra.mxu0 %v1016_v60 }
 0x3bb   :  { %v1245_v7 = vpop.f32.mrf.mxu0 }
 0x3bc   :  { %v1264_v26 = vadd.f32 %v1245_v7, %v922_v18  ;;  %v1335_v7 = vmul.u32 16, %v1334_v44  ;;  %v1432_v44 = vld [vmem:[%s3031_s5 + $0x88] sm:$0xff] }
 0x3bd   :  { %v1247_v10 = vpop.f32.mrf.mxu0 }
 0x3be   :  { %v1265_v11 = vadd.f32 %v1247_v10, %v924_v8  ;;  %v1280_v39 = vadd.f32 %v1275_v21, %v1264_v26  ;;  %vm2777_vm2 = vcmp.lt.s32.totalorder %v2764_v3, %v1335_v7  ;;  %v2911_v7 = vld [vmem:[%s3033_s7] sm:$0x1f] }
 0x3bf   :  { %v1249_v13 = vpop.f32.mrf.mxu0  ;;  %vm1337_vm3 = vmand %vm2772_vm1, %vm2777_vm2 }
 0x3c0   :  { %v2752_v41 = vadd.f32 %v1279_v12, %v1265_v11  ;;  %v1266_v57 = vadd.f32 %v1249_v13, %v926_v15  ;;  %v1288_v54 = vmul.f32 0.5, %v1280_v39 }
 0x3c1   :  { %v1251_v16 = vpop.f32.mrf.mxu0 }
 0x3c2   :  { %v1267_v17 = vadd.f32 %v1251_v16, %v928_v14  ;;  %v1289_v28 = vmul.f32 0.5, %v2752_v41  ;;  %v2758_v31 = vadd.f32 %v1275_v21, %v1266_v57 }
 0x3c3   :  { %v1255_v19 = vpop.f32.mrf.mxu0 }
 0x3c4   :  { %v2755_v22 = vadd.f32 %v1279_v12, %v1267_v17  ;;  %v1268_v0 = vadd.f32 %v1255_v19, %v932_v56  ;;  %2419 = vtanh.f32 %v1289_v28  ;;  %v1290_v46 = vmul.f32 0.5, %v2758_v31  ;;  %v1429_v28 = vld [vmem:[%s3031_s5 + $0x70] sm:$0xff] }
 0x3c5   :  { %v1257_v27 = vpop.f32.mrf.mxu0  ;;  %v2927_v56 = vld [vmem:[%s3030_s4 + $0x30] sm:$0xff]  }
 0x3c6   :  { %v1284_v29 = vadd.f32 %v1275_v21, %v1268_v0  ;;  %v1269_v30 = vadd.f32 %v1257_v27, %v934_v20  ;;  %v1291_v32 = vmul.f32 0.5, %v2755_v22  ;;  %v1446_v27 = vld [vmem:[%s3031_s5 + $0xf8] sm:$0xff] }
 0x3c7   :  { %v1259_v33 = vpop.f32.mrf.mxu0 }
 0x3c8   :  { %v1285_v37 = vadd.f32 %v1279_v12, %v1269_v30  ;;  %v1270_v38 = vadd.f32 %v1259_v33, %v936_v25  ;;  %v1292_v34 = vmul.f32 0.5, %v1284_v29  ;;  %2421 = vtanh.f32 %v1291_v32  ;;  %v1430_v25 = vld [vmem:[%s3031_s5 + $0x78] sm:$0xff]  ;;  %v1428_v30 = vld [vmem:[%s3031_s5 + $0x68] sm:$0xff]  ;;  %v1427_v32 = vld [vmem:[%s3031_s5 + $0x60] sm:$0xff] }
 0x3c9   :  { %v1261_v40 = vpop.f32.mrf.mxu0  ;;  %v1442_v33 = vld [vmem:[%s3031_s5 + $0xd8] sm:$0xff] }
 0x3ca   :  { %v1293_v42 = vmul.f32 0.5, %v1285_v37  ;;  %v1286_v43 = vadd.f32 %v1275_v21, %v1270_v38  ;;  %v1271_v45 = vadd.f32 %v1261_v40, %v938_v35  ;;  %v1426_v35 = vld [vmem:[%s3031_s5 + $0x58] sm:$0xff]  ;;  %v1425_v38 = vld [vmem:[%s3031_s5 + $0x50] sm:$0xff]  ;;  %v1439_v40 = vld [vmem:[%s3031_s5 + $0xc0] sm:$0xff] }
 0x3cc   :  { %2423 = vtanh.f32 %v1293_v42  ;;  %v1294_v49 = vmul.f32 0.5, %v1286_v43  ;;  %v1287_v51 = vadd.f32 %v1279_v12, %v1271_v45  ;;  %v1423_v42 = vld [vmem:[%s3031_s5 + $0x40] sm:$0xff]  ;;  %v1422_v45 = vld [vmem:[%s3031_s5 + $0x38] sm:$0xff] }
 0x3cd   :  { %2425 = vtanh.f32 %v1292_v34  ;;  %v1424_v34 = vld [vmem:[%s3031_s5 + $0x48] sm:$0xff] }
 0x3ce   :  { %2427 = vtanh.f32 %v1294_v49  ;;  %v1295_v55 = vmul.f32 0.5, %v1287_v51  ;;  %v1421_v49 = vld [vmem:[%s3031_s5 + $0x30] sm:$0xff] }
 0x3cf   :  { %2429 = vtanh.f32 %v1290_v46  ;;  %v1437_v46 = vld [vmem:[%s3031_s5 + $0xb0] sm:$0xff] }
 0x3d0   :  { %2431 = vtanh.f32 %v1295_v55  ;;  %v1435_v55 = vld [vmem:[%s3031_s5 + $0xa0] sm:$0xff] }
 0x3d1   :  { %2433 = vtanh.f32 %v1288_v54  ;;  %v2420_v50 = vpop.eup %2419  ;;  %v1420_v54 = vld [vmem:[%s3031_s5 + $0x28] sm:$0xff] }
 0x3d2   :  { %v1305_v10 = vadd.f32 1.0, %v2420_v50  ;;  %v1419_v50 = vld [vmem:[%s3031_s5 + $0x20] sm:$0xff] }
 0x3d4   :  { %v1313_v18 = vmul.f32 0.5, %v1305_v10 }
 0x3d5   :  { %v2422_v52 = vpop.eup %2421 }
 0x3d6   :  { %v1307_v2 = vadd.f32 1.0, %v2422_v52  ;;  %v2801_v0 = vmul.f32 %v1313_v18, %v2752_v41  ;;  %v1445_v41 = vld [vmem:[%s3031_s5 + $0xf0] sm:$0xff]  ;;  %v1434_v52 = vld [vmem:[%s3031_s5 + $0x98] sm:$0xff]  ;;  %v2932_v18 = vld [vmem:[%s3030_s4 + $0x68] sm:$0xff]  }
 0x3d8   :  { %v1315_v14 = vmul.f32 0.5, %v1307_v2  ;;  %v1522_v2 = vld [vmem:[#allocation8] sm:$0xff] }
 0x3d9   :  { %v2424_v47 = vpop.eup %2423 }
 0x3da   :  { %v2426_v36 = vpop.eup %2425  ;;  %v1309_v59 = vadd.f32 1.0, %v2424_v47  ;;  %v2789_v20 = vmul.f32 %v1315_v14, %v2755_v22  ;;  %v1338_v22 = vsel %vm1337_vm3, 1.0, %v2562_v61  ;;  %v1418_v47 = vld [vmem:[%s3031_s5 + $0x18] sm:$0xff] }
 0x3db   :  { %v2428_v58 = vpop.eup %2427  ;;  %v1308_v62 = vadd.f32 1.0, %v2426_v36  ;;  %v1433_v36 = vld [vmem:[%s3031_s5 + $0x90] sm:$0xff]  ;;  %v2387_v14 = vld [vmem:[%s3030_s4 + $0x78] sm:$0xff]  }
 0x3dc   :  { %v2430_v53 = vpop.eup %2429  ;;  %v1310_v48 = vadd.f32 1.0, %v2428_v58  ;;  %v1317_v9 = vmul.f32 0.5, %v1309_v59  ;;  %v1417_v58 = vld [vmem:[%s3031_s5 + $0x10] sm:$0xff]  ;;  %v1415_v59 = vld [vmem:[%s3031_s5] sm:$0xff]  ;;  %2157 = vmatprep.subr.bf16.mxu0 %v2387_v14 }
 0x3dd   :  { %v2432_v60 = vpop.eup %2431  ;;  %v1306_v4 = vadd.f32 1.0, %v2430_v53  ;;  %v1316_v12 = vmul.f32 0.5, %v1308_v62  ;;  %v1416_v53 = vld [vmem:[%s3031_s5 + $0x8] sm:$0xff] }
 0x3de   :  { %v2434_v63 = vpop.eup %2433  ;;  %v1311_v1 = vadd.f32 1.0, %v2432_v60  ;;  %v1318_v5 = vmul.f32 0.5, %v1310_v48  ;;  %v2782_v17 = vmul.f32 %v1317_v9, %v1285_v37  ;;  %v1441_v37 = vld [vmem:[%s3031_s5 + $0xd0] sm:$0xff]  ;;  %v1431_v48 = vld [vmem:[%s3031_s5 + $0x80] sm:$0xff] }
 0x3df   :  { %v1304_v11 = vadd.f32 1.0, %v2434_v63  ;;  %v1314_v15 = vmul.f32 0.5, %v1306_v4  ;;  %v2784_v19 = vmul.f32 %v1316_v12, %v1284_v29  ;;  %v1444_v29 = vld [vmem:[%s3031_s5 + $0xe8] sm:$0xff]  ;;  %v1532_v4 = vcombine.high %v1522_v2, %v1522_v2 }
 0x3e0   :  { %v1319_v8 = vmul.f32 0.5, %v1311_v1  ;;  %v2769_v16 = vmul.f32 %v1318_v5, %v1286_v43  ;;  %v1438_v43 = vld [vmem:[%s3031_s5 + $0xb8] sm:$0xff]  ;;  %v1449_v5 = vsub.s32 3, %v2679_v24 }
 0x3e1   :  { %v1312_v57 = vmul.f32 0.5, %v1304_v11  ;;  %v2796_v21 = vmul.f32 %v1314_v15, %v2758_v31  ;;  %v1443_v31 = vld [vmem:[%s3031_s5 + $0xe0] sm:$0xff]  ;;  %v2388_v15 = vld [vmem:[%s3030_s4 + $0x38] sm:$0xff]  }
 0x3e2   :  { %v2767_v13 = vmul.f32 %v1319_v8, %v1287_v51  ;;  %v1436_v51 = vld [vmem:[%s3031_s5 + $0xa8] sm:$0xff]  ;;  %v1450_v8 = vrot.slane %v2911_v7, %v1449_v5  ;;  %2158 = vmatpush3.bf16.msra.mxu0 %v2388_v15 }
 0x3e3   :  { %v2803_v26 = vmul.f32 %v1312_v57, %v1280_v39  ;;  %v1440_v39 = vld [vmem:[%s3031_s5 + $0xc8] sm:$0xff]  ;;  %2159 = vmatprep.subr.bf16.mxu0 %v2389_v23 }
 0x3e4   :  { %1366 = vmatprep.subr.mxu1 %v2767_v13  ;;  %v2938_v57 = vld [vmem:[%s3030_s4 + $0x28] sm:$0xff]  }
 0x3e5   :  { %1367 = vmatpush1.msra.mxu1 %v2769_v16 }
 0x3e6   :  { %1368 = vmatprep.subr.mxu1 %v2782_v17  ;;  %2160 = vmatpush3.bf16.msra.mxu0 %v2927_v56 }
 0x3e7   :  { %1369 = vmatpush1.msra.mxu1 %v2784_v19  ;;  %2161 = vmatprep.subr.bf16.mxu0 %v2932_v18 }
 0x3e8   :  { %1370 = vmatprep.subr.mxu1 %v2789_v20 }
 0x3e9   :  { %1371 = vmatpush1.msra.mxu1 %v2796_v21 }
 0x3ea   :  { %1372 = vmatprep.subr.mxu1 %v2801_v0  ;;  %2162 = vmatpush3.bf16.msra.mxu0 %v2938_v57 }
 0x3eb   :  { %1373 = vmatpush1.msra.mxu1 %v2803_v26 }
 0x3ec   :  { %2096 = vmatmul.mubr.msk.f32.vlgmr.msra.gmra.mxu1 %vm307_vm0, %v1338_v22  ;;  %2122 = vmatprep.subr.mxu1 %v1446_v27  ;;  %v2944_v22 = vld [vmem:[%s3030_s4 + $0x60] sm:$0xff]  }
 0x3ed   :  { %2123 = vmatpush3.msra.mxu1 %v1430_v25  ;;  %v2950_v27 = vld [vmem:[%s3030_s4 + $0x20] sm:$0xff]   ;;  %2163 = vmatprep.subr.bf16.mxu0 %v2944_v22  ;;  %v2956_v25 = vld [vmem:[%s3030_s4 + $0x58] sm:$0xff]  }
 0x3ee   :  { %2124 = vmatprep.subr.mxu1 %v1445_v41  ;;  %2164 = vmatpush3.bf16.msra.mxu0 %v2950_v27  ;;  %v2396_v41 = vld [vmem:[%s3030_s4 + $0x18] sm:$0xff]  }
 0x3ef   :  { %2125 = vmatpush3.msra.mxu1 %v1429_v28  ;;  %2165 = vmatprep.subr.bf16.mxu0 %v2956_v25  ;;  %v1525_v28 = vsub.s32 4, %v2679_v24 }
 0x3f0   :  { %2126 = vmatprep.subr.mxu1 %v1444_v29 }
 0x3f1   :  { %2127 = vmatpush3.msra.mxu1 %v1428_v30  ;;  %v1526_v29 = vrot.slane %v2911_v7, %v1525_v28  ;;  %v2440_v30 = vld [vmem:[%s3033_s7 + $0x8] sm:$0x1f] }
 0x3f2   :  { %2128 = vmatprep.subr.mxu1 %v1443_v31  ;;  %2166 = vmatpush3.bf16.msra.mxu0 %v2396_v41  ;;  %v1530_v31 = vrot.slane %v2440_v30, %v1525_v28 }
 0x3f3   :  { %2129 = vmatpush3.msra.mxu1 %v1427_v32 }
 0x3f4   :  { %2130 = vmatprep.subr.mxu1 %v1442_v33 }
 0x3f5   :  { %2131 = vmatpush3.msra.mxu1 %v1426_v35 }
 0x3f6   :  { %2132 = vmatprep.subr.mxu1 %v1441_v37 }
 0x3f7   :  { %2133 = vmatpush3.msra.mxu1 %v1425_v38 }
 0x3f8   :  { %2134 = vmatprep.subr.mxu1 %v1440_v39 }
 0x3f9   :  { %2135 = vmatpush3.msra.mxu1 %v1424_v34  ;;  %v1629_v34 = vadd.s32 1, %v2764_v3 }
 0x3fa   :  { %2136 = vmatprep.subr.mxu1 %v1439_v40  ;;  %v1624_v40 = vmul.u32 16, %v2764_v3 }
 0x3fb   :  { %2137 = vmatpush3.msra.mxu1 %v1423_v42  ;;  %v1630_v42 = vmul.u32 16, %v1629_v34 }
 0x3fc   :  { %2138 = vmatprep.subr.mxu1 %v1438_v43  ;;  %vm1625_vm6 = vcmp.ge.s32.totalorder %v2679_v24, %v1624_v40 }
 0x3fd   :  { %2139 = vmatpush3.msra.mxu1 %v1422_v45  ;;  %vm1631_vm7 = vcmp.lt.s32.totalorder %v2679_v24, %v1630_v42  ;;  %v1621_v45 = vadd.s32 8, %v2679_v24 }
 0x3fe   :  { %2140 = vmatprep.subr.mxu1 %v1437_v46  ;;  %vm1635_vm8 = vmand %vm1625_vm6, %vm1631_vm7 }
 0x3ff   :  { %2141 = vmatpush3.msra.mxu1 %v1421_v49  ;;  %vm1626_vm10 = vcmp.ge.s32.totalorder %v1621_v45, %v1624_v40  ;;  %vm1632_vm11 = vcmp.lt.s32.totalorder %v1621_v45, %v1630_v42  ;;  %v1639_v3 = vsel %vm1635_vm8, 1.0, %v2562_v61 }
 0x400   :  { %2142 = vmatprep.subr.mxu1 %v1436_v51  ;;  %vm1636_vm13 = vmand %vm1626_vm10, %vm1632_vm11 }
 0x401   :  { %2143 = vmatpush3.msra.mxu1 %v1420_v54  ;;  %v1622_v54 = vadd.s32 16, %v2679_v24 }
 0x402   :  { %2144 = vmatprep.subr.mxu1 %v1435_v55 }
 0x403   :  { %2145 = vmatpush3.msra.mxu1 %v1419_v50  ;;  %vm1627_vm14 = vcmp.ge.s32.totalorder %v1622_v54, %v1624_v40  ;;  %vm1633_vm15 = vcmp.lt.s32.totalorder %v1622_v54, %v1630_v42 }
 0x404   :  { %2146 = vmatprep.subr.mxu1 %v1434_v52  ;;  %v1623_v52 = vadd.s32 24, %v2679_v24  ;;  %vm1637_vm0 = vmand %vm1627_vm14, %vm1633_vm15 }
 0x405   :  { %2147 = vmatpush3.msra.mxu1 %v1418_v47  ;;  %v1640_v47 = vsel %vm1636_vm13, 1.0, %v2562_v61 }
 0x406   :  { %2148 = vmatprep.subr.mxu1 %v1433_v36  ;;  %vm1628_vm1 = vcmp.ge.s32.totalorder %v1623_v52, %v1624_v40  ;;  %vm1634_vm2 = vcmp.lt.s32.totalorder %v1623_v52, %v1630_v42  ;;  %v1641_v36 = vsel %vm1637_vm0, 1.0, %v2562_v61  ;;  %v2444_v42 = vld [vmem:[#allocation2 + $0x18] sm:$0xff] }
 0x407   :  { %2149 = vmatpush3.msra.mxu1 %v1417_v58  ;;  %vm1638_vm3 = vmand %vm1628_vm1, %vm1634_vm2 }
 0x408   :  { %2150 = vmatprep.subr.mxu1 %v1432_v44  ;;  %v1642_v58 = vsel %vm1638_vm3, 1.0, %v2562_v61  ;;  %v2397_v44 = vld [vmem:[%s3030_s4 + $0x50] sm:$0xff]  }
 0x409   :  { %2151 = vmatpush3.msra.mxu1 %v1416_v53  ;;  %v2398_v53 = vld [vmem:[%s3030_s4 + $0x10] sm:$0xff]   ;;  %2167 = vmatprep.subr.bf16.mxu0 %v2397_v44 }
 0x40a   :  { %2152 = vmatprep.subr.mxu1 %v1431_v48  ;;  %2168 = vmatpush3.bf16.msra.mxu0 %v2398_v53  ;;  %v2400_v48 = vld [vmem:[%s3030_s4 + $0x8] sm:$0xff]  }
 0x40b   :  { %2153 = vmatpush3.msra.mxu1 %v1415_v59  ;;  %v2401_v59 = vld [vmem:[%s3030_s4 + $0x40] sm:$0xff]  }
 0x40c   :  { %2097 = vmatprep.subr.msk.mxu1 %vm1537_vm4, %v1532_v4 }
 0x4ac   :  { %v1408_v60 = vpop.f32.mrf.mxu1 }
 0x4ad   :  { %v1413_v1 = vmul.f32 0.00390625, %v1408_v60  ;;  %v2402_v60 = vld [vmem:[%s3030_s4] sm:$0xff]  }
 0x4ae   :  { %v1410_v62 = vpop.f32.mrf.mxu1 }
 0x4af   :  { %v1414_v63 = vmul.f32 0.00390625, %v1410_v62 }
 0x4b1   :  { %1515 = vmatprep.mubr.f32.mxu1 %v1414_v63 }
 0x4b2   :  { %1516 = vmatmul.mubr.f32.vlgmr.msra.gmra.mxu1 %v1413_v1 }
 0x4b3   :  { %1606 = vmatprep.mubr.f32.mxu1 %v2562_v61  ;;  %2098 = vmatpush1.msk.msra.mxu1 %vm1537_vm4, %v1522_v2 }
 0x572   :  { %v2154_v6 = vpop.f32.mrf.mxu1 }
 0x574   :  { %v2155_v9 = vpop.f32.mrf.mxu1 }
 0x575   :  { %v2156_v10 = vadd.f32 %v2155_v9, %v2154_v6 }
 0x577   :  { %v1518_v11 = vadd.f32 %v2156_v10, %v1450_v8 }
 0x579   :  { %v1521_v12 = vmax.f32 %v1518_v11, 0.0 }
 0x57b   :  { %2099 = vmatmul.mubr.msk.f32.vlgmr.msra.gmra.mxu1 %vm1533_vm5, %v1521_v12 }
 0x57c   :  { %1727 = vmatprep.mubr.f32.mxu1 %v2562_v61 }
 0x63b   :  { %v1608_v32 = vpop.f32.mrf.mxu1 }
 0x63c   :  { %v1609_v33 = vadd.f32 %v1608_v32, %v1526_v29  ;;  %v2441_v29 = vld [vmem:[#allocation2] sm:$0xff]  ;;  %v2442_v32 = vld [vmem:[#allocation2 + $0x8] sm:$0xff] }
 0x63d   :  { %v1610_v35 = vpop.f32.mrf.mxu1 }
 0x63e   :  { %v1613_v37 = vmul.f32 0.5, %v1609_v33  ;;  %v1611_v38 = vadd.f32 %v1610_v35, %v1530_v31 }
 0x640   :  { %2435 = vtanh.f32 %v1613_v37  ;;  %v1614_v39 = vmul.f32 0.5, %v1611_v38 }
 0x642   :  { %2437 = vtanh.f32 %v1614_v39 }
 0x64d   :  { %v2436_v43 = vpop.eup %2435 }
 0x64e   :  { %v1617_v49 = vadd.f32 1.0, %v2436_v43 }
 0x64f   :  { %v2438_v46 = vpop.eup %2437 }
 0x650   :  { %v1618_v51 = vadd.f32 1.0, %v2438_v46  ;;  %v1619_v50 = vmul.f32 0.5, %v1617_v49 }
 0x652   :  { %v1620_v55 = vmul.f32 0.5, %v1618_v51 }
 0x654   :  { %2100 = vmatprep.subr.msk.mxu1 %vm1656_vm9, %v1620_v55 }
 0x655   :  { %2101 = vmatpush1.msk.msra.mxu1 %vm1656_vm9, %v1619_v50 }
 0x656   :  { %2102 = vmatmul.mubr.msk.f32.vlgmr.msra.gmra.mxu1 %vm1643_vm12, %v1639_v3  ;;  %2185 = vmatprep.subr.bf16.mxu1 %v2387_v14 }
 0x657   :  { %1733 = vmatprep.mubr.f32.mxu1 %v2562_v61  ;;  %2193 = vmatpush3.bf16.msra.mxu1 %v2388_v15 }
 0x658   :  { %2186 = vmatprep.subr.bf16.mxu1 %v2389_v23 }
 0x65a   :  { %2103 = vmatmul.mubr.msk.f32.gmra.mxu1 %vm1643_vm12, %v1640_v47 }
 0x65b   :  { %1739 = vmatprep.mubr.f32.mxu1 %v2562_v61  ;;  %2194 = vmatpush3.bf16.msra.mxu1 %v2927_v56 }
 0x65c   :  { %2187 = vmatprep.subr.bf16.mxu1 %v2932_v18 }
 0x65e   :  { %2104 = vmatmul.mubr.msk.f32.gmra.mxu1 %vm1643_vm12, %v1641_v36 }
 0x65f   :  { %1745 = vmatprep.mubr.f32.mxu1 %v2562_v61  ;;  %2195 = vmatpush3.bf16.msra.mxu1 %v2938_v57  ;;  %v2399_v61 = vld [vmem:[%s3030_s4 + $0x48] sm:$0xff]   ;;  %s2563_s4 = smov [#allocation10]  }
 0x660   :  { %2188 = vmatprep.subr.bf16.mxu1 %v2944_v22  ;;  %2169 = vmatprep.subr.bf16.mxu0 %v2399_v61  ;;  %s1958_s12 = sshll.u32 %s2563_s4, 4  ;;  %s1959_s12 = int_to_ptr.vmem [resolvable:$true] %s1958_s12 }
 0x661   :  { %2170 = vmatpush3.bf16.msra.mxu0 %v2400_v48  ;;  %s2525_s2 = scalar_lea.vmem %s1959_s12, 512  ;;  %p2530_p7 = scmp.lt.s32.totalorder %s1959_s12, %s1959_s12 }
 0x662   :  { %2105 = vmatmul.mubr.msk.f32.gmra.mxu1 %vm1643_vm12, %v1642_v58  ;;  %2171 = vmatprep.subr.bf16.mxu0 %v2401_v59  ;;  %p2526_p6 = scmp.ne.s32.totalorder %s1959_s12, %s2525_s2  ;;  %p2531_p8 = scmp.lt.s32.totalorder %s2525_s2, %s2525_s2 }
 0x663   :  { %2196 = vmatpush3.bf16.msra.mxu1 %v2950_v27 }
 0x664   :  { %2189 = vmatprep.subr.bf16.mxu1 %v2956_v25  ;;  %p2532_p9 = por %p2531_p8, %p2530_p7 }
 0x665   :  { %2172 = vmatpush3.bf16.msra.mxu0 %v2402_v60 }
 0x666   :  { %p2533_p10 = pnand %p2532_p9, %p2526_p6 }
 0x667   :  { %2197 = vmatpush3.bf16.msra.mxu1 %v2396_v41 }
 0x668   :  { %2190 = vmatprep.subr.bf16.mxu1 %v2397_v44 }
 0x66b   :  { %2198 = vmatpush3.bf16.msra.mxu1 %v2398_v53 }
 0x66c   :  { %2191 = vmatprep.subr.bf16.mxu1 %v2399_v61 }
 0x66f   :  { %2199 = vmatpush3.bf16.msra.mxu1 %v2400_v48 }
 0x670   :  { %2192 = vmatprep.subr.bf16.mxu1 %v2401_v59 }
 0x673   :  { %2200 = vmatpush3.bf16.msra.mxu1 %v2402_v60 }
 0x716   :  { %v1729_v62 = vpop.f32.mrf.mxu1 }
 0x717   :  { %v1752_v8 = vmul.f32 %v1729_v62, %v2803_v26  ;;  %v1798_v26 = vsub.s32 2, %v2679_v24 }
 0x718   :  { %v1731_v63 = vpop.f32.mrf.mxu1 }
 0x719   :  { %v1753_v5 = vmul.f32 %v1731_v63, %v2801_v0  ;;  %v1799_v22 = vrot.slane %v2911_v7, %v1798_v26  ;;  %v2443_v7 = vld [vmem:[#allocation2 + $0x10] sm:$0xff] }
 0x71a   :  { %v1735_v1 = vpop.f32.mrf.mxu1 }
 0x71b   :  { %v1754_v2 = vmul.f32 %v1735_v1, %v2796_v21 }
 0x71c   :  { %v1737_v4 = vpop.f32.mrf.mxu1 }
 0x71d   :  { %v1755_v6 = vmul.f32 %v1737_v4, %v2789_v20  ;;  %v1760_v11 = vpack.c.bf16 %v1754_v2, %v1752_v8 }
 0x71e   :  { %v1741_v9 = vpop.f32.mrf.mxu1 }
 0x71f   :  { %v1761_v10 = vpack.c.bf16 %v1755_v6, %v1753_v5  ;;  %v1756_v0 = vmul.f32 %v1741_v9, %v2784_v19 }
 0x720   :  { %v1743_v12 = vpop.f32.mrf.mxu1 }
 0x721   :  { %1928 = vmatprep.mubr.bf16.mxu0 %v1761_v10  ;;  %v1757_v56 = vmul.f32 %v1743_v12, %v2782_v17 }
 0x722   :  { %v1747_v14 = vpop.f32.mrf.mxu1  ;;  %1929 = vmatmul.mubr.bf16.vlgmr.msra.gmra.mxu0 %v1760_v11 }
 0x723   :  { %v1758_v15 = vmul.f32 %v1747_v14, %v2769_v16 }
 0x724   :  { %v1749_v23 = vpop.f32.mrf.mxu1 }
 0x725   :  { %v1759_v21 = vmul.f32 %v1749_v23, %v2767_v13  ;;  %v1762_v20 = vpack.c.bf16 %v1758_v15, %v1756_v0 }
 0x727   :  { %v1763_v18 = vpack.c.bf16 %v1759_v21, %v1757_v56 }
 0x729   :  { %1936 = vmatprep.mubr.bf16.mxu1 %v1763_v18 }
 0x72a   :  { %1937 = vmatmul.mubr.bf16.vlgmr.msra.gmra.mxu1 %v1762_v20 }
 0x7e2   :  { %v2173_v57 = vpop.f32.mrf.mxu0 }
 0x7e4   :  { %v2174_v27 = vpop.f32.mrf.mxu0 }
 0x7e5   :  { %v2175_v25 = vadd.f32 %v2174_v27, %v2173_v57 }
 0x7e6   :  { %v2176_v41 = vpop.f32.mrf.mxu0 }
 0x7e7   :  { %v1931_v16 = vadd.f32 %v2175_v25, %v1799_v22 }
 0x7e8   :  { %v2177_v28 = vpop.f32.mrf.mxu0 }
 0x7e9   :  { %v1945_v17 = vadd.f32 %v2441_v29, %v1931_v16  ;;  %v2178_v30 = vadd.f32 %v2177_v28, %v2176_v41 }
 0x7ea   :  { %v2179_v13 = vpop.f32.mrf.mxu1 }
 0x7eb   :  { %1949 = vst [vmem:[#allocation10] sm:$0xff] %v1945_v17  ;;  %v1934_v19 = vadd.f32 %v2178_v30, %v1799_v22 }
 0x7ec   :  { %v2180_v31 = vpop.f32.mrf.mxu1 }
 0x7ed   :  { %v1946_v33 = vadd.f32 %v2442_v32, %v1934_v19  ;;  %v2181_v35 = vadd.f32 %v2180_v31, %v2179_v13 }
 0x7ee   :  { %v2182_v37 = vpop.f32.mrf.mxu1 }
 0x7ef   :  { %1950 = vst [vmem:[#allocation10 + $0x8] sm:$0xff] %v1946_v33  ;;  %v1939_v24 = vadd.f32 %v2181_v35, %v1799_v22 }
 0x7f0   :  { %v2183_v38 = vpop.f32.mrf.mxu1 }
 0x7f1   :  { %v1947_v39 = vadd.f32 %v2443_v7, %v1939_v24  ;;  %v2184_v34 = vadd.f32 %v2183_v38, %v2182_v37 }
 0x7f3   :  { %1951 = vst [vmem:[#allocation10 + $0x10] sm:$0xff] %v1947_v39  ;;  %v1942_v40 = vadd.f32 %v2184_v34, %v1799_v22 }
 0x7f5   :  { %v1948_v43 = vadd.f32 %v2444_v42, %v1942_v40 }
 0x7f7   :  { %1952 = vst [vmem:[#allocation10 + $0x18] sm:$0xff] %v1948_v43 }
 0x7f8   :  { %2536 = shalt.err (!%p2533_p10)
}
 0x7f9   :  { %1964 = dma.vmem_to_hbm [thread:$0]  %s1959_s12, 512, %s3034_s8, [#allocation4], %s2557_s15, %s2557_s15, %s2558_s16  }
 0x7fa   :  { %2551 = dma.done.wait [#allocation4], 512  }
 0x7fb   :  { %2552 = vsyncadd [#allocation4], 4294966784 }
 0x7fc   :  { %1968 = vsyncpa [#allocation3], 1 }
 0x7fd   :  { %1969 = vsyncpa [#allocation6], 1 }
 0x7fe   :  { %1970 = vsyncpa [#allocation9], 1 }
 0x7ff   :  { %1971 = vsyncpa [#allocation4], 1 }

</bundles_post_ra>
